<compile_context>
chip_gen: v5e
topology: v5e:2x2
jax: 0.10.0
libtpu: 0.0.40
codegen_flags: <defaults>
</compile_context>

<pallas_src>
import functools

import jax
import jax.numpy as jnp
from jax import lax
from jax.experimental import pallas as pl
from jax.experimental.pallas import tpu as pltpu


def _round_up(x, m):
    return ((x + m - 1) // m) * m


def _tile_bytes(shape, itemsize=4):
    """VMEM bytes for a buffer including (8,128) tile padding of the minor dims."""
    s = [int(d) for d in shape]
    s[-1] = _round_up(s[-1], 128)
    if len(s) >= 2:
        s[-2] = _round_up(s[-2], 8)
    total = itemsize
    for d in s:
        total *= d
    return total


def _vmem_plan(n, h, w, c_in, c_out, hp, wp, h_out, w_out, k):
    """Pick the batch block and a matching vmem_limit_bytes, per TPU generation."""
    try:
        cap = int(pltpu.get_tpu_info().vmem_capacity_bytes)
    except Exception:
        cap = 64 << 20                       # conservative (v7x-sized) fallback
    vmem_limit = min(cap // 2, 64 << 20)     # v5e/v6e: 64 MiB, v7x: 32 MiB
    budget = (vmem_limit * 3) // 4
    hw = h_out * w_out

    def est(b):
        xin = 2 * _tile_bytes((b, h, w, c_in))          # double-buffered input
        wts = 2 * _tile_bytes((k * k, c_out, c_in))     # fused weights
        sft = 2 * _tile_bytes((c_out, 1))
        out = 2 * _tile_bytes((b, c_out, hw))           # double-buffered output
        scr = _tile_bytes((b, hp, wp, c_in))            # padded f32 scratch
        live = 3 * _tile_bytes((c_out, hw)) + 2 * _tile_bytes((hw, c_in))
        return xin + wts + sft + out + scr + live + (2 << 20)

    # Keep >=2 grid steps when possible so the 'parallel' axis can shard
    # across v7x's two TensorCores.
    b_cap = n if n < 2 else max(1, n // 2)
    best = 1
    for b in range(1, b_cap + 1):
        if n % b == 0 and est(b) <= budget:
            best = b
    vmem_limit = min(int(cap * 0.9), max(vmem_limit, est(best) + (4 << 20)))
    return best, int(vmem_limit)


def _sepconv_kernel(x_ref, w_ref, shift_ref, out_ref, xpad_ref, *,
                    k, stride, dilation, padding, h, w, h_out, w_out,
                    use_bf16_mxu):
    # x_ref     : (B_blk, H, W, C_in)          unpadded NHWC input block
    # w_ref     : (k*k, C_out, C_in)           fused depthwise * pointwise * BN-scale
    # shift_ref : (C_out, 1)                   folded BN shift
    # out_ref   : (B_blk, C_out, H_out*W_out)  NCHW-flat output block (lane-dense)
    # xpad_ref  : VMEM scratch (B_blk, Hp, Wp, C_in) zero-padded, ReLU'd input
    b_blk = x_ref.shape[0]
    c_in = x_ref.shape[3]
    c_out = out_ref.shape[1]
    hp = h + 2 * padding
    wp = w + 2 * padding
    hw = h_out * w_out

    # Zero only the padding border strips (interior is fully overwritten below).
    # Done every grid step so results stay correct when the grid is sharded
    # across TensorCores (each core has its own scratch).
    if padding > 0:
        zrow = jnp.zeros((b_blk, padding, wp, c_in), jnp.float32)
        xpad_ref[:, 0:padding, :, :] = zrow
        xpad_ref[:, padding + h:hp, :, :] = zrow
        zcol = jnp.zeros((b_blk, hp, padding, c_in), jnp.float32)
        xpad_ref[:, :, 0:padding, :] = zcol
        xpad_ref[:, :, padding + w:wp, :] = zcol

    # ReLU fused into the interior scratch write (zero border is already post-ReLU).
    xpad_ref[:, padding:padding + h, padding:padding + w, :] = (
        jnp.maximum(x_ref[...], 0.0).astype(jnp.float32))

    shift = shift_ref[...]                               # (C_out, 1)

    def process_image(b):
        # Per-image accumulation: acc stays small (one image's HW rows) and is
        # stored exactly once; C_out sits on sublanes, HW on lanes (lane-dense).
        acc = jnp.zeros((c_out, hw), jnp.float32)
        for kh in range(k):                              # static k*k tap loop
            for kw in range(k):
                h0 = kh * dilation
                w0 = kw * dilation
                if stride == 1:
                    hsl = pl.ds(h0, h_out)
                    wsl = pl.ds(w0, w_out)
                else:
                    # Strided Ref load keeps the stride in the memory path
                    # (NAS-201 reduction cells, stride=2).
                    hsl = pl.ds(h0, h_out, stride=stride)
                    wsl = pl.ds(w0, w_out, stride=stride)
                # Ref-level slice: only the needed window streams through vregs.
                patch = xpad_ref[b, hsl, wsl, :]          # (H_out, W_out, C_in)
                patch2d = patch.reshape(hw, c_in)         # free when W_out % 8 == 0
                wt = w_ref[kh * k + kw]                   # (C_out, C_in)
                if use_bf16_mxu:
                    patch2d = patch2d.astype(jnp.bfloat16)
                    wt = wt.astype(jnp.bfloat16)
                # (C_out, C_in) x (HW, C_in) contracted on C_in -> (C_out, HW)
                acc = acc + lax.dot_general(
                    wt, patch2d,
                    dimension_numbers=(((1,), (1,)), ((), ())),
                    preferred_element_type=jnp.float32)
        out_ref[b] = (acc + shift).astype(out_ref.dtype)  # BN shift; scale pre-folded

    if b_blk <= 4:
        for b in range(b_blk):                            # short fixed loop: unroll
            process_image(b)
    else:
        def body(b, carry):
            process_image(b)
            return carry
        lax.fori_loop(0, b_blk, body, 0)


def sepconv_forward(x_nchw, w_dw, w_pw, scale, shift, *, kernel_size, stride,
                    padding, dilation, use_bf16_mxu=False):
    """x_nchw: (N, C_in, H, W); w_dw: (C_in, 1, k, k); w_pw: (C_out, C_in, 1, 1).
    scale/shift: (C_out,) folded eval-mode BatchNorm."""
    n, c_in, h, w = x_nchw.shape
    c_out = w_pw.shape[0]
    k = kernel_size
    h_out = (h + 2 * padding - dilation * (k - 1) - 1) // stride + 1
    w_out = (w + 2 * padding - dilation * (k - 1) - 1) // stride + 1
    hp, wp = h + 2 * padding, w + 2 * padding
    hw = h_out * w_out

    # Input glue: NCHW -> NHWC (channels on the lane dim inside the kernel).
    # Output needs NO transpose: the kernel emits (N, C_out, H_out*W_out).
    x_nhwc = jnp.transpose(x_nchw, (0, 2, 3, 1))

    # Fuse depthwise, pointwise and BN scale into per-tap (C_out, C_in) weights:
    #   w_fused[tap, o, i] = bn_scale[o] * w_pw[o, i] * w_dw[tap, i]
    wdw_kki = jnp.transpose(w_dw[:, 0, :, :], (1, 2, 0))            # (k, k, C_in)
    wpw_oi = w_pw[:, :, 0, 0] * scale[:, None]                      # (C_out, C_in)
    w_fused = wdw_kki[:, :, None, :] * wpw_oi[None, None, :, :]     # (k,k,C_out,C_in)
    w_fused = w_fused.reshape(k * k, c_out, c_in).astype(jnp.float32)
    shift_col = shift.reshape(c_out, 1).astype(jnp.float32)

    b_blk, vmem_limit = _vmem_plan(n, h, w, c_in, c_out, hp, wp, h_out, w_out, k)

    kern = functools.partial(
        _sepconv_kernel, k=k, stride=stride, dilation=dilation, padding=padding,
        h=h, w=w, h_out=h_out, w_out=w_out, use_bf16_mxu=use_bf16_mxu)

    flops = 2 * n * hw * k * k * c_in * c_out
    bytes_accessed = 4 * (n * h * w * c_in + k * k * c_out * c_in + c_out
                          + n * c_out * hw)

    out_flat = pl.pallas_call(
        kern,
        out_shape=jax.ShapeDtypeStruct((n, c_out, hw), x_nchw.dtype),
        grid_spec=pltpu.PrefetchScalarGridSpec(
            num_scalar_prefetch=0,
            grid=(n // b_blk,),
            in_specs=[
                pl.BlockSpec((b_blk, h, w, c_in), lambda i: (i, 0, 0, 0)),
                pl.BlockSpec((k * k, c_out, c_in), lambda i: (0, 0, 0)),
                pl.BlockSpec((c_out, 1), lambda i: (0, 0)),
            ],
            out_specs=pl.BlockSpec((b_blk, c_out, hw), lambda i: (i, 0, 0)),
            scratch_shapes=[pltpu.VMEM((b_blk, hp, wp, c_in), jnp.float32)],
        ),
        compiler_params=pltpu.CompilerParams(
            dimension_semantics=("parallel",),
            vmem_limit_bytes=vmem_limit),
        cost_estimate=pl.CostEstimate(
            flops=int(flops), transcendentals=0, bytes_accessed=int(bytes_accessed)),
    )(x_nhwc, w_fused, shift_col)

    # Free contiguous reshape: (N, C_out, H_out*W_out) -> NCHW.
    return out_flat.reshape(n, c_out, h_out, w_out)


def ref_sepconv(x, w_dw, w_pw, scale, shift, *, stride, padding, dilation):
    """Pure-JAX reference (NCHW) for correctness checking."""
    c_in = x.shape[1]
    r = jnp.maximum(x, 0.0)
    y = jax.lax.conv_general_dilated(
        r, w_dw, (stride, stride), [(padding, padding)] * 2,
        rhs_dilation=(dilation, dilation),
        dimension_numbers=('NCHW', 'OIHW', 'NCHW'),
        feature_group_count=c_in)
    y = jax.lax.conv_general_dilated(
        y, w_pw, (1, 1), [(0, 0)] * 2,
        dimension_numbers=('NCHW', 'OIHW', 'NCHW'))
    return y * scale[None, :, None, None] + shift[None, :, None, None]


if __name__ == "__main__":
    N, C_in, C_out, H, W = 2, 4, 8, 16, 16
    k, stride, padding, dilation = 3, 1, 1, 1

    key = jax.random.PRNGKey(0)
    k1, k2, k3, k4, k5, k6, k7 = jax.random.split(key, 7)
    x = jax.random.normal(k1, (N, C_in, H, W), jnp.float32)
    w_dw = jax.random.normal(k2, (C_in, 1, k, k), jnp.float32) * 0.1
    w_pw = jax.random.normal(k3, (C_out, C_in, 1, 1), jnp.float32) * 0.1
    gamma = 1.0 + 0.1 * jax.random.normal(k4, (C_out,), jnp.float32)
    beta = 0.1 * jax.random.normal(k5, (C_out,), jnp.float32)
    running_mean = 0.1 * jax.random.normal(k6, (C_out,), jnp.float32)
    running_var = jax.nn.softplus(jax.random.normal(k7, (C_out,), jnp.float32)) + 0.5
    eps = 1e-5

    # TODO(synk): BatchNorm is implemented in eval mode (running stats folded into
    # scale/shift); PyTorch training-mode batch statistics are not computed in-kernel.
    scale = gamma / jnp.sqrt(running_var + eps)
    shift = beta - running_mean * scale

    out = sepconv_forward(x, w_dw, w_pw, scale, shift, kernel_size=k,
                          stride=stride, padding=padding, dilation=dilation)
    out = jax.block_until_ready(out)

    ref = ref_sepconv(x, w_dw, w_pw, scale, shift, stride=stride,
                      padding=padding, dilation=dilation)
    assert out.shape == ref.shape == (N, C_out, H, W)
    err = float(jnp.max(jnp.abs(out - ref)))
    assert jnp.allclose(out, ref, atol=1e-4, rtol=1e-3), err

    print("KERNEL_OK")
</pallas_src>

<mosaic_0001>
module attributes {stable_mosaic.version = 11 : i64} {
  func.func @_sepconv_kernel(%arg0: i32, %arg1: memref<1x16x16x4xf32, #tpu.memory_space<vmem>>, %arg2: memref<9x8x4xf32, #tpu.memory_space<vmem>>, %arg3: memref<8x1xf32, #tpu.memory_space<vmem>>, %arg4: memref<1x8x256xf32, #tpu.memory_space<vmem>>, %arg5: memref<1x18x18x4xf32, #tpu.memory_space<vmem>>) attributes {dimension_semantics = [#tpu.dimension_semantics<parallel>], iteration_bounds = array<i64: 2>, scalar_prefetch = 0 : i64, scratch_operands = 1 : i64, tpu.core_type = #tpu.core_type<tc>, window_params = [{transform_indices = @transform_0, window_bounds = array<i64: 1, 16, 16, 4>}, {pipeline_mode = #tpu.pipeline_mode<synchronous>, transform_indices = @transform_1, window_bounds = array<i64: 9, 8, 4>}, {pipeline_mode = #tpu.pipeline_mode<synchronous>, transform_indices = @transform_2, window_bounds = array<i64: 8, 1>}, {transform_indices = @transform_3, window_bounds = array<i64: 1, 8, 256>}]} {
    %cst = arith.constant 0.000000e+00 : f32
    %0 = vector.broadcast %cst : f32 to vector<1x1x18x4xf32>
    %c0 = arith.constant 0 : index
    %c0_0 = arith.constant 0 : index
    %c0_1 = arith.constant 0 : index
    %c0_2 = arith.constant 0 : index
    %1 = vector.load %arg5[%c0, %c0_0, %c0_1, %c0_2] : memref<1x18x18x4xf32, #tpu.memory_space<vmem>>, vector<1x1x18x4xf32>
    tpu.vector_store %arg5[%c0, %c0_0, %c0_1, %c0_2], %0 {strides = array<i32>} : memref<1x18x18x4xf32, #tpu.memory_space<vmem>>, vector<1x1x18x4xf32>,
    %c0_3 = arith.constant 0 : index
    %c17 = arith.constant 17 : index
    %c0_4 = arith.constant 0 : index
    %c0_5 = arith.constant 0 : index
    %2 = vector.load %arg5[%c0_3, %c17, %c0_4, %c0_5] : memref<1x18x18x4xf32, #tpu.memory_space<vmem>>, vector<1x1x18x4xf32>
    tpu.vector_store %arg5[%c0_3, %c17, %c0_4, %c0_5], %0 {strides = array<i32>} : memref<1x18x18x4xf32, #tpu.memory_space<vmem>>, vector<1x1x18x4xf32>,
    %cst_6 = arith.constant 0.000000e+00 : f32
    %3 = vector.broadcast %cst_6 : f32 to vector<1x18x1x4xf32>
    %c0_7 = arith.constant 0 : index
    %c0_8 = arith.constant 0 : index
    %c0_9 = arith.constant 0 : index
    %c0_10 = arith.constant 0 : index
    %4 = vector.load %arg5[%c0_7, %c0_8, %c0_9, %c0_10] : memref<1x18x18x4xf32, #tpu.memory_space<vmem>>, vector<1x18x1x4xf32>
    tpu.vector_store %arg5[%c0_7, %c0_8, %c0_9, %c0_10], %3 {strides = array<i32>} : memref<1x18x18x4xf32, #tpu.memory_space<vmem>>, vector<1x18x1x4xf32>,
    %c0_11 = arith.constant 0 : index
    %c0_12 = arith.constant 0 : index
    %c17_13 = arith.constant 17 : index
    %c0_14 = arith.constant 0 : index
    %5 = vector.load %arg5[%c0_11, %c0_12, %c17_13, %c0_14] : memref<1x18x18x4xf32, #tpu.memory_space<vmem>>, vector<1x18x1x4xf32>
    tpu.vector_store %arg5[%c0_11, %c0_12, %c17_13, %c0_14], %3 {strides = array<i32>} : memref<1x18x18x4xf32, #tpu.memory_space<vmem>>, vector<1x18x1x4xf32>,
    %c0_15 = arith.constant 0 : index
    %c0_16 = arith.constant 0 : index
    %c0_17 = arith.constant 0 : index
    %c0_18 = arith.constant 0 : index
    %6 = vector.load %arg1[%c0_15, %c0_16, %c0_17, %c0_18] : memref<1x16x16x4xf32, #tpu.memory_space<vmem>>, vector<1x16x16x4xf32>
    %cst_19 = arith.constant 0.000000e+00 : f32
    %7 = vector.broadcast %cst_19 : f32 to vector<1x16x16x4xf32>
    %8 = arith.maximumf %6, %7 : vector<1x16x16x4xf32>
    %c0_20 = arith.constant 0 : index
    %c1 = arith.constant 1 : index
    %c1_21 = arith.constant 1 : index
    %c0_22 = arith.constant 0 : index
    %9 = vector.load %arg5[%c0_20, %c1, %c1_21, %c0_22] : memref<1x18x18x4xf32, #tpu.memory_space<vmem>>, vector<1x16x16x4xf32>
    tpu.vector_store %arg5[%c0_20, %c1, %c1_21, %c0_22], %8 {strides = array<i32>} : memref<1x18x18x4xf32, #tpu.memory_space<vmem>>, vector<1x16x16x4xf32>,
    %c0_23 = arith.constant 0 : index
    %c0_24 = arith.constant 0 : index
    %10 = vector.load %arg3[%c0_23, %c0_24] : memref<8x1xf32, #tpu.memory_space<vmem>>, vector<8x1xf32>
    %cst_25 = arith.constant 0.000000e+00 : f32
    %11 = vector.broadcast %cst_25 : f32 to vector<8x256xf32>
    %c0_26 = arith.constant 0 : index
    %c0_27 = arith.constant 0 : index
    %c0_28 = arith.constant 0 : index
    %c0_29 = arith.constant 0 : index
    %12 = vector.load %arg5[%c0_26, %c0_27, %c0_28, %c0_29] : memref<1x18x18x4xf32, #tpu.memory_space<vmem>>, vector<1x16x16x4xf32>
    %13 = vector.shape_cast %12 : vector<1x16x16x4xf32> to vector<16x16x4xf32>
    %14 = vector.shape_cast %13 : vector<16x16x4xf32> to vector<256x4xf32>
    %c0_30 = arith.constant 0 : index
    %c0_31 = arith.constant 0 : index
    %c0_32 = arith.constant 0 : index
    %15 = vector.load %arg2[%c0_30, %c0_31, %c0_32] : memref<9x8x4xf32, #tpu.memory_space<vmem>>, vector<1x8x4xf32>
    %16 = vector.shape_cast %15 : vector<1x8x4xf32> to vector<8x4xf32>
    %cst_33 = arith.constant dense<0.000000e+00> : vector<8x256xf32>
    %17 = tpu.matmul %16, %14, %cst_33 {dimension_numbers = #tpu.dot_dimension_numbers<[1], [1], [0], [0], [0, 0, 1, 0], [], []>} : vector<8x4xf32>, vector<256x4xf32>, vector<8x256xf32> -> vector<8x256xf32>
    %18 = arith.addf %11, %17 : vector<8x256xf32>
    %c0_34 = arith.constant 0 : index
    %c0_35 = arith.constant 0 : index
    %c1_36 = arith.constant 1 : index
    %c0_37 = arith.constant 0 : index
    %19 = vector.load %arg5[%c0_34, %c0_35, %c1_36, %c0_37] : memref<1x18x18x4xf32, #tpu.memory_space<vmem>>, vector<1x16x16x4xf32>
    %20 = vector.shape_cast %19 : vector<1x16x16x4xf32> to vector<16x16x4xf32>
    %21 = vector.shape_cast %20 : vector<16x16x4xf32> to vector<256x4xf32>
    %c1_38 = arith.constant 1 : index
    %c0_39 = arith.constant 0 : index
    %c0_40 = arith.constant 0 : index
    %22 = vector.load %arg2[%c1_38, %c0_39, %c0_40] : memref<9x8x4xf32, #tpu.memory_space<vmem>>, vector<1x8x4xf32>
    %23 = vector.shape_cast %22 : vector<1x8x4xf32> to vector<8x4xf32>
    %cst_41 = arith.constant dense<0.000000e+00> : vector<8x256xf32>
    %24 = tpu.matmul %23, %21, %cst_41 {dimension_numbers = #tpu.dot_dimension_numbers<[1], [1], [0], [0], [0, 0, 1, 0], [], []>} : vector<8x4xf32>, vector<256x4xf32>, vector<8x256xf32> -> vector<8x256xf32>
    %25 = arith.addf %18, %24 : vector<8x256xf32>
    %c0_42 = arith.constant 0 : index
    %c0_43 = arith.constant 0 : index
    %c2 = arith.constant 2 : index
    %c0_44 = arith.constant 0 : index
    %26 = vector.load %arg5[%c0_42, %c0_43, %c2, %c0_44] : memref<1x18x18x4xf32, #tpu.memory_space<vmem>>, vector<1x16x16x4xf32>
    %27 = vector.shape_cast %26 : vector<1x16x16x4xf32> to vector<16x16x4xf32>
    %28 = vector.shape_cast %27 : vector<16x16x4xf32> to vector<256x4xf32>
    %c2_45 = arith.constant 2 : index
    %c0_46 = arith.constant 0 : index
    %c0_47 = arith.constant 0 : index
    %29 = vector.load %arg2[%c2_45, %c0_46, %c0_47] : memref<9x8x4xf32, #tpu.memory_space<vmem>>, vector<1x8x4xf32>
    %30 = vector.shape_cast %29 : vector<1x8x4xf32> to vector<8x4xf32>
    %cst_48 = arith.constant dense<0.000000e+00> : vector<8x256xf32>
    %31 = tpu.matmul %30, %28, %cst_48 {dimension_numbers = #tpu.dot_dimension_numbers<[1], [1], [0], [0], [0, 0, 1, 0], [], []>} : vector<8x4xf32>, vector<256x4xf32>, vector<8x256xf32> -> vector<8x256xf32>
    %32 = arith.addf %25, %31 : vector<8x256xf32>
    %c0_49 = arith.constant 0 : index
    %c1_50 = arith.constant 1 : index
    %c0_51 = arith.constant 0 : index
    %c0_52 = arith.constant 0 : index
    %33 = vector.load %arg5[%c0_49, %c1_50, %c0_51, %c0_52] : memref<1x18x18x4xf32, #tpu.memory_space<vmem>>, vector<1x16x16x4xf32>
    %34 = vector.shape_cast %33 : vector<1x16x16x4xf32> to vector<16x16x4xf32>
    %35 = vector.shape_cast %34 : vector<16x16x4xf32> to vector<256x4xf32>
    %c3 = arith.constant 3 : index
    %c0_53 = arith.constant 0 : index
    %c0_54 = arith.constant 0 : index
    %36 = vector.load %arg2[%c3, %c0_53, %c0_54] : memref<9x8x4xf32, #tpu.memory_space<vmem>>, vector<1x8x4xf32>
    %37 = vector.shape_cast %36 : vector<1x8x4xf32> to vector<8x4xf32>
    %cst_55 = arith.constant dense<0.000000e+00> : vector<8x256xf32>
    %38 = tpu.matmul %37, %35, %cst_55 {dimension_numbers = #tpu.dot_dimension_numbers<[1], [1], [0], [0], [0, 0, 1, 0], [], []>} : vector<8x4xf32>, vector<256x4xf32>, vector<8x256xf32> -> vector<8x256xf32>
    %39 = arith.addf %32, %38 : vector<8x256xf32>
    %c0_56 = arith.constant 0 : index
    %c1_57 = arith.constant 1 : index
    %c1_58 = arith.constant 1 : index
    %c0_59 = arith.constant 0 : index
    %40 = vector.load %arg5[%c0_56, %c1_57, %c1_58, %c0_59] : memref<1x18x18x4xf32, #tpu.memory_space<vmem>>, vector<1x16x16x4xf32>
    %41 = vector.shape_cast %40 : vector<1x16x16x4xf32> to vector<16x16x4xf32>
    %42 = vector.shape_cast %41 : vector<16x16x4xf32> to vector<256x4xf32>
    %c4 = arith.constant 4 : index
    %c0_60 = arith.constant 0 : index
    %c0_61 = arith.constant 0 : index
    %43 = vector.load %arg2[%c4, %c0_60, %c0_61] : memref<9x8x4xf32, #tpu.memory_space<vmem>>, vector<1x8x4xf32>
    %44 = vector.shape_cast %43 : vector<1x8x4xf32> to vector<8x4xf32>
    %cst_62 = arith.constant dense<0.000000e+00> : vector<8x256xf32>
    %45 = tpu.matmul %44, %42, %cst_62 {dimension_numbers = #tpu.dot_dimension_numbers<[1], [1], [0], [0], [0, 0, 1, 0], [], []>} : vector<8x4xf32>, vector<256x4xf32>, vector<8x256xf32> -> vector<8x256xf32>
    %46 = arith.addf %39, %45 : vector<8x256xf32>
    %c0_63 = arith.constant 0 : index
    %c1_64 = arith.constant 1 : index
    %c2_65 = arith.constant 2 : index
    %c0_66 = arith.constant 0 : index
    %47 = vector.load %arg5[%c0_63, %c1_64, %c2_65, %c0_66] : memref<1x18x18x4xf32, #tpu.memory_space<vmem>>, vector<1x16x16x4xf32>
    %48 = vector.shape_cast %47 : vector<1x16x16x4xf32> to vector<16x16x4xf32>
    %49 = vector.shape_cast %48 : vector<16x16x4xf32> to vector<256x4xf32>
    %c5 = arith.constant 5 : index
    %c0_67 = arith.constant 0 : index
    %c0_68 = arith.constant 0 : index
    %50 = vector.load %arg2[%c5, %c0_67, %c0_68] : memref<9x8x4xf32, #tpu.memory_space<vmem>>, vector<1x8x4xf32>
    %51 = vector.shape_cast %50 : vector<1x8x4xf32> to vector<8x4xf32>
    %cst_69 = arith.constant dense<0.000000e+00> : vector<8x256xf32>
    %52 = tpu.matmul %51, %49, %cst_69 {dimension_numbers = #tpu.dot_dimension_numbers<[1], [1], [0], [0], [0, 0, 1, 0], [], []>} : vector<8x4xf32>, vector<256x4xf32>, vector<8x256xf32> -> vector<8x256xf32>
    %53 = arith.addf %46, %52 : vector<8x256xf32>
    %c0_70 = arith.constant 0 : index
    %c2_71 = arith.constant 2 : index
    %c0_72 = arith.constant 0 : index
    %c0_73 = arith.constant 0 : index
    %54 = vector.load %arg5[%c0_70, %c2_71, %c0_72, %c0_73] : memref<1x18x18x4xf32, #tpu.memory_space<vmem>>, vector<1x16x16x4xf32>
    %55 = vector.shape_cast %54 : vector<1x16x16x4xf32> to vector<16x16x4xf32>
    %56 = vector.shape_cast %55 : vector<16x16x4xf32> to vector<256x4xf32>
    %c6 = arith.constant 6 : index
    %c0_74 = arith.constant 0 : index
    %c0_75 = arith.constant 0 : index
    %57 = vector.load %arg2[%c6, %c0_74, %c0_75] : memref<9x8x4xf32, #tpu.memory_space<vmem>>, vector<1x8x4xf32>
    %58 = vector.shape_cast %57 : vector<1x8x4xf32> to vector<8x4xf32>
    %cst_76 = arith.constant dense<0.000000e+00> : vector<8x256xf32>
    %59 = tpu.matmul %58, %56, %cst_76 {dimension_numbers = #tpu.dot_dimension_numbers<[1], [1], [0], [0], [0, 0, 1, 0], [], []>} : vector<8x4xf32>, vector<256x4xf32>, vector<8x256xf32> -> vector<8x256xf32>
    %60 = arith.addf %53, %59 : vector<8x256xf32>
    %c0_77 = arith.constant 0 : index
    %c2_78 = arith.constant 2 : index
    %c1_79 = arith.constant 1 : index
    %c0_80 = arith.constant 0 : index
    %61 = vector.load %arg5[%c0_77, %c2_78, %c1_79, %c0_80] : memref<1x18x18x4xf32, #tpu.memory_space<vmem>>, vector<1x16x16x4xf32>
    %62 = vector.shape_cast %61 : vector<1x16x16x4xf32> to vector<16x16x4xf32>
    %63 = vector.shape_cast %62 : vector<16x16x4xf32> to vector<256x4xf32>
    %c7 = arith.constant 7 : index
    %c0_81 = arith.constant 0 : index
    %c0_82 = arith.constant 0 : index
    %64 = vector.load %arg2[%c7, %c0_81, %c0_82] : memref<9x8x4xf32, #tpu.memory_space<vmem>>, vector<1x8x4xf32>
    %65 = vector.shape_cast %64 : vector<1x8x4xf32> to vector<8x4xf32>
    %cst_83 = arith.constant dense<0.000000e+00> : vector<8x256xf32>
    %66 = tpu.matmul %65, %63, %cst_83 {dimension_numbers = #tpu.dot_dimension_numbers<[1], [1], [0], [0], [0, 0, 1, 0], [], []>} : vector<8x4xf32>, vector<256x4xf32>, vector<8x256xf32> -> vector<8x256xf32>
    %67 = arith.addf %60, %66 : vector<8x256xf32>
    %c0_84 = arith.constant 0 : index
    %c2_85 = arith.constant 2 : index
    %c2_86 = arith.constant 2 : index
    %c0_87 = arith.constant 0 : index
    %68 = vector.load %arg5[%c0_84, %c2_85, %c2_86, %c0_87] : memref<1x18x18x4xf32, #tpu.memory_space<vmem>>, vector<1x16x16x4xf32>
    %69 = vector.shape_cast %68 : vector<1x16x16x4xf32> to vector<16x16x4xf32>
    %70 = vector.shape_cast %69 : vector<16x16x4xf32> to vector<256x4xf32>
    %c8 = arith.constant 8 : index
    %c0_88 = arith.constant 0 : index
    %c0_89 = arith.constant 0 : index
    %71 = vector.load %arg2[%c8, %c0_88, %c0_89] : memref<9x8x4xf32, #tpu.memory_space<vmem>>, vector<1x8x4xf32>
    %72 = vector.shape_cast %71 : vector<1x8x4xf32> to vector<8x4xf32>
    %cst_90 = arith.constant dense<0.000000e+00> : vector<8x256xf32>
    %73 = tpu.matmul %72, %70, %cst_90 {dimension_numbers = #tpu.dot_dimension_numbers<[1], [1], [0], [0], [0, 0, 1, 0], [], []>} : vector<8x4xf32>, vector<256x4xf32>, vector<8x256xf32> -> vector<8x256xf32>
    %74 = arith.addf %67, %73 : vector<8x256xf32>
    %75 = vector.broadcast %10 : vector<8x1xf32> to vector<8x256xf32>
    %76 = arith.addf %74, %75 : vector<8x256xf32>
    %c0_91 = arith.constant 0 : index
    %c0_92 = arith.constant 0 : index
    %c0_93 = arith.constant 0 : index
    %77 = vector.load %arg4[%c0_91, %c0_92, %c0_93] : memref<1x8x256xf32, #tpu.memory_space<vmem>>, vector<1x8x256xf32>
    %78 = vector.shape_cast %77 : vector<1x8x256xf32> to vector<8x256xf32>
    %79 = vector.shape_cast %76 : vector<8x256xf32> to vector<1x8x256xf32>
    tpu.vector_store %arg4[%c0_91, %c0_92, %c0_93], %79 {strides = array<i32>} : memref<1x8x256xf32, #tpu.memory_space<vmem>>, vector<1x8x256xf32>,
    return
  }
  func.func @transform_0(%arg0: i32) -> (i32, i32, i32, i32) {
    %c0_i32 = arith.constant 0 : i32
    %c0_i32_0 = arith.constant 0 : i32
    %c0_i32_1 = arith.constant 0 : i32
    %c0_i32_2 = arith.constant 0 : i32
    return %arg0, %c0_i32, %c0_i32_0, %c0_i32_1 : i32, i32, i32, i32
  }
  func.func @transform_1(%arg0: i32) -> (i32, i32, i32) {
    %c0_i32 = arith.constant 0 : i32
    %c0_i32_0 = arith.constant 0 : i32
    %c0_i32_1 = arith.constant 0 : i32
    %c0_i32_2 = arith.constant 0 : i32
    return %c0_i32, %c0_i32_0, %c0_i32_1 : i32, i32, i32
  }
  func.func @transform_2(%arg0: i32) -> (i32, i32) {
    %c0_i32 = arith.constant 0 : i32
    %c0_i32_0 = arith.constant 0 : i32
    %c0_i32_1 = arith.constant 0 : i32
    return %c0_i32, %c0_i32_0 : i32, i32
  }
  func.func @transform_3(%arg0: i32) -> (i32, i32, i32) {
    %c0_i32 = arith.constant 0 : i32
    %c0_i32_0 = arith.constant 0 : i32
    %c0_i32_1 = arith.constant 0 : i32
    return %arg0, %c0_i32, %c0_i32_0 : i32, i32, i32
  }
}

</mosaic_0001>

<bundles_post_ra>
// kernel: tpu_custom_call.1
= control target key start
LH: loop header
LB: loop body
LE: loop exit
PB: predicated region body
PF: predicated region fallthrough
CT: control target
= control target key end

     0   :  { %8 = vsyncpa [#allocation4], 0  ;;  %s3452_s0 = inlined_call_operand.vmem [shape: f32[2,16,16,4], index: 0, kind: input, shape index: {}]   ;;  %s3453_s1 = inlined_call_operand.vmem [shape: f32[9,8,4], index: 1, kind: input, shape index: {}]   ;;  %s3454_s2 = inlined_call_operand.vmem [shape: f32[8,1], index: 2, kind: input, shape index: {}]   ;;  %s3455_s3 = inlined_call_operand.hbm [shape: f32[2,8,256], index: 3, kind: output, shape index: {}]  }
   0x1   :  { %10 = vsyncpa [#allocation4 + $0x1], 0  ;;  %s2425_s12 = smov 0   ;;  %s2427_s13 = smov 0  }
   0x2   :  { %s2429_s14 = smov 0   ;;  %s2431_s15 = smov 0  }
   0x3 LB: > { %s2446_s16 = sadd.s32 4294967295, %s2401_s15   ;;  %s1969_s17 = sadd.s32 4294967294, %s2401_s15   ;;  %s2401_s15 = sphi %s2431_s15, %s3548_s15   ;;  %s2397_s14 = sphi %s2429_s14, %s3547_s14   ;;  %s2393_s13 = sphi %s2427_s13, %s3546_s13   ;;  %s2389_s12 = sphi %s2425_s12, %s3545_s12  }
   0x4   : > { %s2450_s18 = sadd.s32 1, %s2401_s15   ;;  %s91_s19 = sadd.s32 1, %s2397_s14 }
   0x5   : > { %s88_s20 = ssub.s32 %s2401_s15, %s2450_s18  ;;  %p101_p0 = scmp.ne.s32.totalorder %s2397_s14, %s2393_s13 }
   0x6   : > { %p89_p1 = scmp.eq.s32.totalorder %s88_s20, 0  ;;  %p102_p2 = scmp.eq.s32.totalorder %s2446_s16, 1 }
   0x7   : > { %p107_p3 = scmp.ne.s32.totalorder %s2393_s13, %s2389_s12  ;;  %p108_p4 = scmp.eq.s32.totalorder %s1969_s17, 1 }
   0x8   : > { %s2461_s21 = scalar_select %p89_p1, %s2397_s14, %s91_s19  }
   0x9   : > { %p2463_p5 = por %p102_p2, %p101_p0  ;;  %p2467_p6 = por %p108_p4, %p107_p3 }
   0xa   : > { %p1972_p7 = scmp.ge.s32.totalorder %s2401_s15, 1  ;;  %p140_p8 = scmp.lt.s32.totalorder %s2401_s15, 3 }
   0xc   : > { %p141_p9 = pnand %p1972_p7, %p140_p8 }
   0xe   : > { %144 = sbr.rel (%p141_p9) target bundleno = 515 (0x203), region = 32 }
  0x13   : > { %p164_p10 = scmp.lt.s32.totalorder %s2446_s16, 1  ;;  %vm178_vm0 = vcmask 24576   ;;  %vm169_vm1 = vcmask 31744   ;;  %v2403_v0 = vmov 0.0   ;;  %vm172_vm2 = vcmask 25600   ;;  %s161_s4 = sand.u32 1, %s2393_s13  }
  0x14   : > { %186 = vst.msk [vmem:[#allocation2 + $0xa8] sm:$0x1] %vm178_vm0, %v2403_v0  ;;  %s1973_s5 = sshll.u32 %s161_s4, 4  ;;  %s2296_s6 = sshll.u32 %s2446_s16, 4 }
  0x15   : > { %s165_s24 = scalar_select %p164_p10, %s2446_s16, 1  ;;  %170 = vst.msk [vmem:[#allocation2] sm:$0xff] %vm169_vm1, %v2403_v0 }
  0x16   : > { %171 = vst.msk [vmem:[#allocation2 + $0x8] sm:$0xff] %vm169_vm1, %v2403_v0  ;;  %s1905_s9 = scalar_lea.hbm %s3455_s3, %s2296_s6  ;;  %s163_s10 = scalar_lea.vmem [#allocation3], %s1973_s5 }
  0x17   : > { %s2295_s25 = sshll.u32 %s165_s24, 8  ;;  %175 = vst.msk [vmem:[#allocation2 + $0x198] sm:$0xff] %vm169_vm1, %v2403_v0  ;;  %s1907_s11 = sshll.u32 %s163_s10, 4  ;;  %s1908_s11 = int_to_ptr.vmem [resolvable:$true] %s1907_s11 }
  0x18   : > { %s2486_s28 = scalar_lea.vmem %s3452_s0, %s2295_s25  ;;  %176 = vst.msk [vmem:[#allocation2 + $0x1a0] sm:$0xff] %vm169_vm1, %v2403_v0  ;;  %s1909_s17 = sshll.u32 %s1905_s9, 4  ;;  %s1910_s17 = int_to_ptr.hbm [resolvable:$true] %s1909_s17 }
  0x19   : > { %v228_v1 = vld [vmem:[%s2486_s28 + $0x68] sm:$0xff]  ;;  %v227_v3 = vld [vmem:[%s2486_s28 + $0x60] sm:$0xff]  ;;  %180 = vst.msk [vmem:[#allocation2 + $0x18] sm:$0x1] %vm178_vm0, %v2403_v0  ;;  %v226_v17 = vld [vmem:[%s2486_s28 + $0x58] sm:$0xff]  ;;  %s1894_s16 = scalar_lea.sflag [#allocation4], %s161_s4 }
  0x1a   : > { %v244_v2 = vld [vmem:[%s2486_s28 + $0xe8] sm:$0xff]  ;;  %v260_v4 = vmax.f32 %v228_v1, 0.0  ;;  %v259_v6 = vmax.f32 %v227_v3, 0.0  ;;  %v243_v7 = vld [vmem:[%s2486_s28 + $0xe0] sm:$0xff]  ;;  %181 = vst.msk [vmem:[#allocation2 + $0x30] sm:$0x1] %vm178_vm0, %v2403_v0 }
  0x1b   : > { %v276_v5 = vmax.f32 %v244_v2, 0.0  ;;  %v275_v8 = vmax.f32 %v243_v7, 0.0  ;;  %182 = vst.msk [vmem:[#allocation2 + $0x48] sm:$0x1] %vm178_vm0, %v2403_v0  ;;  %v242_v18 = vld [vmem:[%s2486_s28 + $0xd8] sm:$0xff]  ;;  %v225_v19 = vld [vmem:[%s2486_s28 + $0x50] sm:$0xff] }
  0x1c   : > { %293 = vst.msk [vmem:[#allocation2 + $0xb1] sm:$0xff] %vm169_vm1, %v260_v4  ;;  %v258_v20 = vmax.f32 %v226_v17, 0.0  ;;  %v241_v21 = vld [vmem:[%s2486_s28 + $0xd0] sm:$0xff]  ;;  %v274_v22 = vmax.f32 %v242_v18, 0.0  ;;  %v224_v23 = vld [vmem:[%s2486_s28 + $0x48] sm:$0xff]  ;;  %v257_v24 = vmax.f32 %v225_v19, 0.0 }
  0x1d   : > { %309 = vst.msk [vmem:[#allocation2 + $0x171] sm:$0xff] %vm169_vm1, %v276_v5  ;;  %v240_v25 = vld [vmem:[%s2486_s28 + $0xc8] sm:$0xff]  ;;  %v273_v26 = vmax.f32 %v241_v21, 0.0  ;;  %v223_v27 = vld [vmem:[%s2486_s28 + $0x40] sm:$0xff]  ;;  %v256_v28 = vmax.f32 %v224_v23, 0.0  ;;  %v222_v31 = vld [vmem:[%s2486_s28 + $0x38] sm:$0xff] }
  0x1e   : > { %292 = vst.msk [vmem:[#allocation2 + $0xa9] sm:$0xff] %vm169_vm1, %v259_v6  ;;  %v239_v29 = vld [vmem:[%s2486_s28 + $0xc0] sm:$0xff]  ;;  %v272_v30 = vmax.f32 %v240_v25, 0.0  ;;  %v255_v32 = vmax.f32 %v223_v27, 0.0  ;;  %v238_v33 = vld [vmem:[%s2486_s28 + $0xb8] sm:$0xff]  ;;  %v221_v35 = vld [vmem:[%s2486_s28 + $0x30] sm:$0xff] }
  0x1f   : > { %308 = vst.msk [vmem:[#allocation2 + $0x169] sm:$0xff] %vm169_vm1, %v275_v8  ;;  %v271_v34 = vmax.f32 %v239_v29, 0.0  ;;  %v254_v36 = vmax.f32 %v222_v31, 0.0  ;;  %v237_v37 = vld [vmem:[%s2486_s28 + $0xb0] sm:$0xff]  ;;  %v270_v38 = vmax.f32 %v238_v33, 0.0  ;;  %v220_v39 = vld [vmem:[%s2486_s28 + $0x28] sm:$0xff] }
  0x20   : > { %183 = vst.msk [vmem:[#allocation2 + $0x60] sm:$0x1] %vm178_vm0, %v2403_v0  ;;  %v253_v40 = vmax.f32 %v221_v35, 0.0  ;;  %v236_v41 = vld [vmem:[%s2486_s28 + $0xa8] sm:$0xff]  ;;  %v269_v43 = vmax.f32 %v237_v37, 0.0  ;;  %v219_v44 = vld [vmem:[%s2486_s28 + $0x20] sm:$0xff] }
  0x21   : > { %184 = vst.msk [vmem:[#allocation2 + $0x78] sm:$0x1] %vm178_vm0, %v2403_v0  ;;  %v252_v46 = vmax.f32 %v220_v39, 0.0  ;;  %v235_v47 = vld [vmem:[%s2486_s28 + $0xa0] sm:$0xff]  ;;  %v268_v50 = vmax.f32 %v236_v41, 0.0  ;;  %v218_v51 = vld [vmem:[%s2486_s28 + $0x18] sm:$0xff] }
  0x22   : > { %185 = vst.msk [vmem:[#allocation2 + $0x90] sm:$0x1] %vm178_vm0, %v2403_v0  ;;  %v251_v54 = vmax.f32 %v219_v44, 0.0  ;;  %v234_v55 = vld [vmem:[%s2486_s28 + $0x98] sm:$0xff]  ;;  %v267_v57 = vmax.f32 %v235_v47, 0.0  ;;  %v217_v58 = vld [vmem:[%s2486_s28 + $0x10] sm:$0xff] }
  0x23   : > { %v2510_v9 = vld [vmem:[#allocation2 + $0xb1] sm:$0xff]  ;;  %187 = vst.msk [vmem:[#allocation2 + $0xc0] sm:$0x1] %vm178_vm0, %v2403_v0  ;;  %v250_v60 = vmax.f32 %v218_v51, 0.0  ;;  %v266_v63 = vmax.f32 %v234_v55, 0.0  ;;  %v216_v1 = vld [vmem:[%s2486_s28 + $0x8] sm:$0xff] }
  0x24   : > { %1977 = vmatpush.xpose.msk.msra.mxu0 %vm169_vm1, %v2510_v9  ;;  %v2516_v10 = vld [vmem:[#allocation2 + $0x171] sm:$0xff]  ;;  %188 = vst.msk [vmem:[#allocation2 + $0xd8] sm:$0x1] %vm178_vm0, %v2403_v0  ;;  %v249_v3 = vmax.f32 %v217_v58, 0.0  ;;  %v232_v4 = vld [vmem:[%s2486_s28 + $0x88] sm:$0xff]  ;;  %v215_v7 = vld [vmem:[%s2486_s28] sm:$0xff] }
  0x25   : > { %1994 = vmatpush.xpose.msk.msra.mxu1 %vm169_vm1, %v2516_v10  ;;  %v2522_v11 = vld [vmem:[#allocation2 + $0xb0] sm:$0xff]  ;;  %189 = vst.msk [vmem:[#allocation2 + $0xf0] sm:$0x1] %vm178_vm0, %v2403_v0  ;;  %v2538_v15 = vld [vmem:[#allocation2 + $0xa8] sm:$0xff]  ;;  %v248_v17 = vmax.f32 %v216_v1, 0.0  ;;  %v231_v18 = vld [vmem:[%s2486_s28 + $0x80] sm:$0xff] }
  0x26   : > { %v2524_v12 = vld [vmem:[#allocation2 + $0xa9] sm:$0xff]  ;;  %2011 = vmatpush.xpose.msk.msra.mxu2 %vm169_vm1, %v2522_v11  ;;  %190 = vst.msk [vmem:[#allocation2 + $0x108] sm:$0x1] %vm178_vm0, %v2403_v0  ;;  %v230_v27 = vld [vmem:[%s2486_s28 + $0x78] sm:$0xff]  ;;  %s2353_s19 = sshra.s32 %s1910_s17, 4  ;;  %s2359_s26 = scalar_lea.hbm %s3455_s3, 32  ;;  %s2354_s19 = int_to_ptr.hbm [resolvable:$true] %s2353_s19 }
  0x27   : > { %v2530_v13 = vld [vmem:[#allocation2 + $0x170] sm:$0xff]  ;;  %191 = vst.msk [vmem:[#allocation2 + $0x120] sm:$0x1] %vm178_vm0, %v2403_v0  ;;  %v262_v33 = vmax.f32 %v230_v27, 0.0  ;;  %s2355_s20 = scalar_lea.hbm %s2354_s19, 16  ;;  %p2360_p0 = scmp.lt.s32.totalorder %s2354_s19, %s3455_s3 }
  0x28   : > { %v2532_v14 = vld [vmem:[#allocation2 + $0x169] sm:$0xff]  ;;  %2028 = vmatpush.xpose.msk.msra.mxu3 %vm169_vm1, %v2530_v13  ;;  %1978 = vmatpush.xpose.msk.msra.mxu0 %vm169_vm1, %v2524_v12  ;;  %192 = vst.msk [vmem:[#allocation2 + $0x138] sm:$0x1] %vm178_vm0, %v2403_v0  ;;  %p2356_p11 = scmp.ne.s32.totalorder %s2354_s19, %s2355_s20  ;;  %p2361_p1 = scmp.lt.s32.totalorder %s2359_s26, %s2355_s20 }
  0x29   : > { %1995 = vmatpush.xpose.msk.msra.mxu1 %vm169_vm1, %v2532_v14  ;;  %193 = vst.msk [vmem:[#allocation2 + $0x150] sm:$0x1] %vm178_vm0, %v2403_v0  ;;  %v233_v61 = vld [vmem:[%s2486_s28 + $0x90] sm:$0xff] }
  0x2a   : > { %2012 = vmatpush.xpose.msk.msra.mxu2 %vm169_vm1, %v2538_v15  ;;  %194 = vst.msk [vmem:[#allocation2 + $0x168] sm:$0x1] %vm178_vm0, %v2403_v0  ;;  %v265_v6 = vmax.f32 %v233_v61, 0.0  ;;  %v229_v29 = vld [vmem:[%s2486_s28 + $0x70] sm:$0xff]  ;;  %p2357_p12 = pnand %p2356_p11, %p2463_p5  ;;  %p2362_p2 = por %p2361_p1, %p2360_p0 }
  0x2b   : > { %195 = vst.msk [vmem:[#allocation2 + $0x180] sm:$0x1] %vm178_vm0, %v2403_v0  ;;  %v245_v31 = vld [vmem:[%s2486_s28 + $0xf0] sm:$0xff] }
  0x2c   : > { %198 = vst.msk [vmem:[#allocation2 + $0x29] sm:$0x1] %vm178_vm0, %v2403_v0  ;;  %p2358_p13 = pneg %p2357_p12 }
  0x2d   : > { %199 = vst.msk [vmem:[#allocation2 + $0x41] sm:$0x1] %vm178_vm0, %v2403_v0 }
  0x2e   : > { %200 = vst.msk [vmem:[#allocation2 + $0x59] sm:$0x1] %vm178_vm0, %v2403_v0  ;;  %p2363_p3 = pnand %p2362_p2, %p2358_p13 }
  0x2f   : > { %201 = vst.msk [vmem:[#allocation2 + $0x71] sm:$0x1] %vm178_vm0, %v2403_v0 }
  0x30   : > { %202 = vst.msk [vmem:[#allocation2 + $0x89] sm:$0x1] %vm178_vm0, %v2403_v0 }
  0x31   : > { %203 = vst.msk [vmem:[#allocation2 + $0xa1] sm:$0x1] %vm178_vm0, %v2403_v0  ;;  %v2568_v16 = vld [vmem:[#allocation2 + $0x168] sm:$0xff] }
  0x32   : > { %204 = vst.msk [vmem:[#allocation2 + $0xb9] sm:$0x1] %vm178_vm0, %v2403_v0  ;;  %2029 = vmatpush.xpose.msk.msra.mxu3 %vm169_vm1, %v2568_v16 }
  0x33   : > { %205 = vst.msk [vmem:[#allocation2 + $0xd1] sm:$0x1] %vm178_vm0, %v2403_v0 }
  0x34   : > { %206 = vst.msk [vmem:[#allocation2 + $0xe9] sm:$0x1] %vm178_vm0, %v2403_v0 }
  0x35   : > { %207 = vst.msk [vmem:[#allocation2 + $0x101] sm:$0x1] %vm178_vm0, %v2403_v0 }
  0x36   : > { %208 = vst.msk [vmem:[#allocation2 + $0x119] sm:$0x1] %vm178_vm0, %v2403_v0 }
  0x37   : > { %209 = vst.msk [vmem:[#allocation2 + $0x131] sm:$0x1] %vm178_vm0, %v2403_v0 }
  0x38   : > { %210 = vst.msk [vmem:[#allocation2 + $0x149] sm:$0x1] %vm178_vm0, %v2403_v0 }
  0x39   : > { %211 = vst.msk [vmem:[#allocation2 + $0x161] sm:$0x1] %vm178_vm0, %v2403_v0 }
  0x3a   : > { %212 = vst.msk [vmem:[#allocation2 + $0x179] sm:$0x1] %vm178_vm0, %v2403_v0 }
  0x3b   : > { %213 = vst.msk [vmem:[#allocation2 + $0x191] sm:$0x1] %vm178_vm0, %v2403_v0 }
  0x3c   : > { %179 = vst.msk [vmem:[#allocation2] sm:$0x1] %vm178_vm0, %v2403_v0 }
  0x3d   : > { %196 = vst.msk [vmem:[#allocation2 + $0x198] sm:$0x1] %vm178_vm0, %v2403_v0 }
  0x3e   : > { %291 = vst.msk [vmem:[#allocation2 + $0x99] sm:$0xff] %vm169_vm1, %v258_v20  ;;  %v264_v20 = vmax.f32 %v232_v4, 0.0 }
  0x3f   : > { %307 = vst.msk [vmem:[#allocation2 + $0x159] sm:$0xff] %vm169_vm1, %v274_v22  ;;  %v247_v22 = vmax.f32 %v215_v7, 0.0 }
  0x40   : > { %290 = vst.msk [vmem:[#allocation2 + $0x91] sm:$0xff] %vm169_vm1, %v257_v24  ;;  %v263_v24 = vmax.f32 %v231_v18, 0.0 }
  0x41   : > { %306 = vst.msk [vmem:[#allocation2 + $0x151] sm:$0xff] %vm169_vm1, %v273_v26 }
  0x42   : > { %289 = vst.msk [vmem:[#allocation2 + $0x81] sm:$0xff] %vm169_vm1, %v256_v28 }
  0x43   : > { %305 = vst.msk [vmem:[#allocation2 + $0x141] sm:$0xff] %vm169_vm1, %v272_v30 }
  0x44   : > { %288 = vst.msk [vmem:[#allocation2 + $0x79] sm:$0xff] %vm169_vm1, %v255_v32 }
  0x45   : > { %v2617_v42 = vld [vmem:[#allocation2 + $0x99] sm:$0xff]  ;;  %304 = vst.msk [vmem:[#allocation2 + $0x139] sm:$0xff] %vm169_vm1, %v271_v34 }
  0x46   : > { %1979 = vmatpush.xpose.msk.msra.mxu0 %vm169_vm1, %v2617_v42  ;;  %v2623_v45 = vld [vmem:[#allocation2 + $0x159] sm:$0xff]  ;;  %287 = vst.msk [vmem:[#allocation2 + $0x69] sm:$0xff] %vm169_vm1, %v254_v36  ;;  %v261_v36 = vmax.f32 %v229_v29, 0.0 }
  0x47   : > { %1996 = vmatpush.xpose.msk.msra.mxu1 %vm169_vm1, %v2623_v45  ;;  %v2629_v48 = vld [vmem:[#allocation2 + $0x98] sm:$0xff]  ;;  %303 = vst.msk [vmem:[#allocation2 + $0x129] sm:$0xff] %vm169_vm1, %v270_v38  ;;  %v2645_v56 = vld [vmem:[#allocation2 + $0x90] sm:$0xff]  ;;  %v277_v38 = vmax.f32 %v245_v31, 0.0  ;;  %v314_v31 = vld [vmem:[#allocation2 + $0x8] sm:$0xff] }
  0x48   : > { %3489 = vst [vmem:[#allocation6_spill] sm:$0xff] %v2629_v48  ;;  %v2631_v49 = vld [vmem:[#allocation2 + $0x91] sm:$0xff]  ;;  %2013 = vmatpush.xpose.msk.msra.mxu2 %vm169_vm1, %v2629_v48 }
  0x49   : > { %v2637_v52 = vld [vmem:[#allocation2 + $0x158] sm:$0xff]  ;;  %286 = vst.msk [vmem:[#allocation2 + $0x61] sm:$0xff] %vm169_vm1, %v253_v40  ;;  %v2651_v59 = vld [vmem:[#allocation2 + $0x150] sm:$0xff]  ;;  %v2657_v62 = vld [vmem:[#allocation2 + $0x81] sm:$0xff] }
  0x4a   : > { %3490 = vst [vmem:[#allocation7_spill] sm:$0xff] %v2637_v52  ;;  %v2639_v53 = vld [vmem:[#allocation2 + $0x151] sm:$0xff]  ;;  %2030 = vmatpush.xpose.msk.msra.mxu3 %vm169_vm1, %v2637_v52  ;;  %1980 = vmatpush.xpose.msk.msra.mxu0 %vm169_vm1, %v2631_v49  ;;  %v2663_v2 = vld [vmem:[#allocation2 + $0x141] sm:$0xff] }
  0x4b   : > { %3491 = vst [vmem:[#allocation8_spill] sm:$0xff] %v2645_v56  ;;  %1997 = vmatpush.xpose.msk.msra.mxu1 %vm169_vm1, %v2639_v53  ;;  %v2669_v5 = vld [vmem:[#allocation2 + $0x80] sm:$0xff]  ;;  %v2691_v23 = vld [vmem:[#allocation2 + $0x78] sm:$0xff] }
  0x4c   : > { %302 = vst.msk [vmem:[#allocation2 + $0x121] sm:$0xff] %vm169_vm1, %v269_v43  ;;  %2014 = vmatpush.xpose.msk.msra.mxu2 %vm169_vm1, %v2645_v56  ;;  %v2675_v8 = vld [vmem:[#allocation2 + $0x140] sm:$0xff]  ;;  %v2696_v25 = vld [vmem:[#allocation2 + $0x138] sm:$0xff] }
  0x4d   : > { %3492 = vst [vmem:[#allocation9_spill] sm:$0xff] %v2651_v59  ;;  %v2681_v19 = vld [vmem:[#allocation2 + $0x79] sm:$0xff]  ;;  %v2701_v26 = vld [vmem:[#allocation2 + $0x69] sm:$0xff] }
  0x4e   : > { %285 = vst.msk [vmem:[#allocation2 + $0x51] sm:$0xff] %vm169_vm1, %v252_v46  ;;  %2031 = vmatpush.xpose.msk.msra.mxu3 %vm169_vm1, %v2651_v59  ;;  %1981 = vmatpush.xpose.msk.msra.mxu0 %vm169_vm1, %v2657_v62  ;;  %v2686_v21 = vld [vmem:[#allocation2 + $0x139] sm:$0xff]  ;;  %v2707_v28 = vld [vmem:[#allocation2 + $0x129] sm:$0xff] }
  0x4f   : > { %301 = vst.msk [vmem:[#allocation2 + $0x111] sm:$0xff] %vm169_vm1, %v268_v50  ;;  %1998 = vmatpush.xpose.msk.msra.mxu1 %vm169_vm1, %v2663_v2  ;;  %v246_v34 = vld [vmem:[%s2486_s28 + $0xf8] sm:$0xff] }
  0x50   : > { %284 = vst.msk [vmem:[#allocation2 + $0x49] sm:$0xff] %vm169_vm1, %v251_v54  ;;  %2015 = vmatpush.xpose.msk.msra.mxu2 %vm169_vm1, %v2669_v5  ;;  %v2713_v30 = vld [vmem:[#allocation2 + $0x68] sm:$0xff]  ;;  %v2738_v39 = vld [vmem:[#allocation2 + $0x60] sm:$0xff]  ;;  %v278_v40 = vmax.f32 %v246_v34, 0.0 }
  0x51   : > { %300 = vst.msk [vmem:[#allocation2 + $0x109] sm:$0xff] %vm169_vm1, %v267_v57  ;;  %v2726_v35 = vld [vmem:[#allocation2 + $0x61] sm:$0xff] }
  0x52   : > { %3493 = vst [vmem:[#allocation10_spill] sm:$0xff] %v2675_v8  ;;  %2032 = vmatpush.xpose.msk.msra.mxu3 %vm169_vm1, %v2675_v8  ;;  %1982 = vmatpush.xpose.msk.msra.mxu0 %vm169_vm1, %v2681_v19  ;;  %v346_v34 = vld [vmem:[#allocation2 + $0x1] sm:$0xff] }
  0x53   : > { %283 = vst.msk [vmem:[#allocation2 + $0x39] sm:$0xff] %vm169_vm1, %v250_v60  ;;  %1999 = vmatpush.xpose.msk.msra.mxu1 %vm169_vm1, %v2686_v21  ;;  %v2719_v32 = vld [vmem:[#allocation2 + $0x128] sm:$0xff]  ;;  %v2744_v41 = vld [vmem:[#allocation2 + $0x120] sm:$0xff] }
  0x54   : > { %299 = vst.msk [vmem:[#allocation2 + $0xf9] sm:$0xff] %vm169_vm1, %v266_v63  ;;  %2016 = vmatpush.xpose.msk.msra.mxu2 %vm169_vm1, %v2691_v23  ;;  %v2732_v37 = vld [vmem:[#allocation2 + $0x121] sm:$0xff] }
  0x55   : > { %282 = vst.msk [vmem:[#allocation2 + $0x31] sm:$0xff] %vm169_vm1, %v249_v3  ;;  %v2749_v43 = vld [vmem:[#allocation2 + $0x51] sm:$0xff] }
  0x56   : > { %3494 = vst [vmem:[#allocation11_spill] sm:$0xff] %v2691_v23  ;;  %2033 = vmatpush.xpose.msk.msra.mxu3 %vm169_vm1, %v2696_v25  ;;  %1983 = vmatpush.xpose.msk.msra.mxu0 %vm169_vm1, %v2701_v26  ;;  %v2754_v44 = vld [vmem:[#allocation2 + $0x111] sm:$0xff] }
  0x57   : > { %298 = vst.msk [vmem:[#allocation2 + $0xf1] sm:$0xff] %vm169_vm1, %v265_v6  ;;  %2000 = vmatpush.xpose.msk.msra.mxu1 %vm169_vm1, %v2707_v28  ;;  %v2768_v47 = vld [vmem:[#allocation2 + $0x49] sm:$0xff] }
  0x58   : > { %3495 = vst [vmem:[#allocation12_spill] sm:$0xff] %v2696_v25  ;;  %2017 = vmatpush.xpose.msk.msra.mxu2 %vm169_vm1, %v2713_v30  ;;  %v2764_v46 = vld [vmem:[#allocation2 + $0x110] sm:$0xff]  ;;  %v2776_v51 = vld [vmem:[#allocation2 + $0x48] sm:$0xff] }
  0x59   : > { %281 = vst.msk [vmem:[#allocation2 + $0x21] sm:$0xff] %vm169_vm1, %v248_v17  ;;  %v2772_v50 = vld [vmem:[#allocation2 + $0x109] sm:$0xff] }
  0x5a   : > { %297 = vst.msk [vmem:[#allocation2 + $0xe1] sm:$0xff] %vm169_vm1, %v264_v20  ;;  %2034 = vmatpush.xpose.msk.msra.mxu3 %vm169_vm1, %v2719_v32  ;;  %1984 = vmatpush.xpose.msk.msra.mxu0 %vm169_vm1, %v2726_v35  ;;  %v2780_v54 = vld [vmem:[#allocation2 + $0x108] sm:$0xff]  ;;  %v2784_v55 = vld [vmem:[#allocation2 + $0x39] sm:$0xff] }
  0x5b   : > { %280 = vst.msk [vmem:[#allocation2 + $0x19] sm:$0xff] %vm169_vm1, %v247_v22  ;;  %2001 = vmatpush.xpose.msk.msra.mxu1 %vm169_vm1, %v2732_v37  ;;  %v2788_v57 = vld [vmem:[#allocation2 + $0xf9] sm:$0xff] }
  0x5c   : > { %3496 = vst [vmem:[#allocation13_spill] sm:$0xff] %v2713_v30  ;;  %2018 = vmatpush.xpose.msk.msra.mxu2 %vm169_vm1, %v2738_v39  ;;  %v2792_v58 = vld [vmem:[#allocation2 + $0x38] sm:$0xff]  ;;  %v2808_v1 = vld [vmem:[#allocation2 + $0x30] sm:$0xff] }
  0x5d   : > { %296 = vst.msk [vmem:[#allocation2 + $0xd9] sm:$0xff] %vm169_vm1, %v263_v24  ;;  %v2800_v61 = vld [vmem:[#allocation2 + $0x31] sm:$0xff] }
  0x5e   : > { %3497 = vst [vmem:[#allocation14_spill] sm:$0xff] %v2719_v32  ;;  %2035 = vmatpush.xpose.msk.msra.mxu3 %vm169_vm1, %v2744_v41  ;;  %1985 = vmatpush.xpose.msk.msra.mxu0 %vm169_vm1, %v2749_v43  ;;  %v2796_v60 = vld [vmem:[#allocation2 + $0xf8] sm:$0xff]  ;;  %v2812_v3 = vld [vmem:[#allocation2 + $0xf0] sm:$0xff] }
  0x5f   : > { %173 = vst.msk [vmem:[#allocation2 + $0x10] sm:$0x3] %vm172_vm2, %v2403_v0  ;;  %2002 = vmatpush.xpose.msk.msra.mxu1 %vm169_vm1, %v2754_v44  ;;  %v2804_v63 = vld [vmem:[#allocation2 + $0xf1] sm:$0xff] }
  0x60   : > { %177 = vst.msk [vmem:[#allocation2 + $0x1a8] sm:$0x3] %vm172_vm2, %v2403_v0  ;;  %v2816_v4 = vld [vmem:[#allocation2 + $0x21] sm:$0xff] }
  0x61   : > { %197 = vst.msk [vmem:[#allocation2 + $0x11] sm:$0x1] %vm178_vm0, %v2403_v0  ;;  %v2820_v6 = vld [vmem:[#allocation2 + $0xe1] sm:$0xff] }
  0x62   : > { %3498 = vst [vmem:[#allocation15_spill] sm:$0xff] %v2738_v39  ;;  %2036 = vmatpush.xpose.msk.msra.mxu3 %vm169_vm1, %v2764_v46  ;;  %1986 = vmatpush.xpose.msk.msra.mxu0 %vm169_vm1, %v2768_v47  ;;  %v2824_v7 = vld [vmem:[#allocation2 + $0x20] sm:$0xff]  ;;  %v2840_v22 = vld [vmem:[#allocation2 + $0x18] sm:$0xff] }
  0x63   : > { %214 = vst.msk [vmem:[#allocation2 + $0x1a9] sm:$0x1] %vm178_vm0, %v2403_v0  ;;  %v2759_v0 = vld [vmem:[#allocation2 + $0x50] sm:$0xff]  ;;  %2003 = vmatpush.xpose.msk.msra.mxu1 %vm169_vm1, %v2772_v50  ;;  %v2832_v18 = vld [vmem:[#allocation2 + $0x19] sm:$0xff] }
  0x64   : > { %3499 = vst [vmem:[#allocation16_spill] sm:$0xff] %v2744_v41  ;;  %2019 = vmatpush.xpose.msk.msra.mxu2 %vm169_vm1, %v2759_v0  ;;  %v2828_v17 = vld [vmem:[#allocation2 + $0xe0] sm:$0xff]  ;;  %v2844_v24 = vld [vmem:[#allocation2 + $0xd8] sm:$0xff] }
  0x65   : > { %295 = vst.msk [vmem:[#allocation2 + $0xc9] sm:$0xff] %vm169_vm1, %v262_v33  ;;  %v2836_v20 = vld [vmem:[#allocation2 + $0xd9] sm:$0xff] }
  0x66   : > { %294 = vst.msk [vmem:[#allocation2 + $0xc1] sm:$0xff] %vm169_vm1, %v261_v36  ;;  %2037 = vmatpush.xpose.msk.msra.mxu3 %vm169_vm1, %v2780_v54  ;;  %1987 = vmatpush.xpose.msk.msra.mxu0 %vm169_vm1, %v2784_v55  ;;  %v347_v27 = vld [vmem:[#allocation2 + $0x9] sm:$0xff] }
  0x67   : > { %310 = vst.msk [vmem:[#allocation2 + $0x181] sm:$0xff] %vm169_vm1, %v277_v38  ;;  %2004 = vmatpush.xpose.msk.msra.mxu1 %vm169_vm1, %v2788_v57  ;;  %v2862_v38 = vld [vmem:[#allocation2 + $0xb2] sm:$0xff] }
  0x68   : > { %3500 = vst [vmem:[#allocation17_spill] sm:$0xff] %v2759_v0  ;;  %2020 = vmatpush.xpose.msk.msra.mxu2 %vm169_vm1, %v2776_v51 }
  0x69   : > { %311 = vst.msk [vmem:[#allocation2 + $0x189] sm:$0xff] %vm169_vm1, %v278_v40  ;;  %v313_v40 = vld [vmem:[#allocation2] sm:$0xff] }
  0x6a   : > { %3501 = vst [vmem:[#allocation18_spill] sm:$0xff] %v2764_v46  ;;  %2038 = vmatpush.xpose.msk.msra.mxu3 %vm169_vm1, %v2796_v60  ;;  %1988 = vmatpush.xpose.msk.msra.mxu0 %vm169_vm1, %v2800_v61 }
  0x6b   : > { %3502 = vst [vmem:[#allocation19_spill] sm:$0xff] %v2776_v51  ;;  %2005 = vmatpush.xpose.msk.msra.mxu1 %vm169_vm1, %v2804_v63 }
  0x6c   : > { %3503 = vst [vmem:[#allocation20_spill] sm:$0xff] %v2780_v54  ;;  %2021 = vmatpush.xpose.msk.msra.mxu2 %vm169_vm1, %v2792_v58  ;;  %v2850_v29 = vld [vmem:[#allocation2 + $0xc9] sm:$0xff] }
  0x6d   : > { %3504 = vst [vmem:[#allocation21_spill] sm:$0xff] %v2792_v58  ;;  %v2855_v33 = vld [vmem:[#allocation2 + $0xc8] sm:$0xff] }
  0x6e   : > { %3505 = vst [vmem:[#allocation22_spill] sm:$0xff] %v2796_v60  ;;  %2039 = vmatpush.xpose.msk.msra.mxu3 %vm169_vm1, %v2812_v3  ;;  %1989 = vmatpush.xpose.msk.msra.mxu0 %vm169_vm1, %v2816_v4  ;;  %v2860_v36 = vld [vmem:[#allocation2 + $0xc1] sm:$0xff] }
  0x6f   : > { %3506 = vst [vmem:[#allocation23_spill] sm:$0xff] %v2804_v63  ;;  %2006 = vmatpush.xpose.msk.msra.mxu1 %vm169_vm1, %v2820_v6  ;;  %v2978_v63 = vld [vmem:[#allocation2 + $0x52] sm:$0xff] }
  0x70   : > { %3507 = vst [vmem:[#allocation24_spill] sm:$0xff] %v2808_v1  ;;  %2022 = vmatpush.xpose.msk.msra.mxu2 %vm169_vm1, %v2808_v1 }
  0x71   : > { %3508 = vst [vmem:[#allocation25_spill] sm:$0xff] %v2812_v3 }
  0x72   : > { %3509 = vst [vmem:[#allocation26_spill] sm:$0xff] %v2816_v4  ;;  %2040 = vmatpush.xpose.msk.msra.mxu3 %vm169_vm1, %v2828_v17  ;;  %1990 = vmatpush.xpose.msk.msra.mxu0 %vm169_vm1, %v2832_v18  ;;  %v2900_v4 = vld [vmem:[#allocation2 + $0x15a] sm:$0xff] }
  0x73   : > { %3510 = vst [vmem:[#allocation27_spill] sm:$0xff] %v2820_v6  ;;  %2007 = vmatpush.xpose.msk.msra.mxu1 %vm169_vm1, %v2836_v20  ;;  %v2896_v6 = vld [vmem:[#allocation2 + $0x9a] sm:$0xff] }
  0x74   : > { %3511 = vst [vmem:[#allocation28_spill] sm:$0xff] %v2832_v18  ;;  %2023 = vmatpush.xpose.msk.msra.mxu2 %vm169_vm1, %v2824_v7  ;;  %v2880_v18 = vld [vmem:[#allocation2 + $0xaa] sm:$0xff] }
  0x75   : > { %3512 = vst [vmem:[#allocation29_spill] sm:$0xff] %v2836_v20  ;;  %v2866_v20 = vld [vmem:[#allocation2 + $0x172] sm:$0xff] }
  0x76   : > { %2041 = vmatpush.xpose.msk.msra.mxu3 %vm169_vm1, %v2844_v24  ;;  %1991 = vmatpush.xpose.msk.msra.mxu0 %vm169_vm1, %v347_v27  ;;  %3513 = vst [vmem:[#allocation30_spill] sm:$0xff] %v2855_v33  ;;  %v2869_v27 = vld [vmem:[#allocation2 + $0xc0] sm:$0xff] }
  0x77   : > { %2008 = vmatpush.xpose.msk.msra.mxu1 %vm169_vm1, %v2850_v29  ;;  %3514 = vst [vmem:[#allocation31_spill] sm:$0xff] %v2869_v27 }
  0x78   : > { %2024 = vmatpush.xpose.msk.msra.mxu2 %vm169_vm1, %v2840_v22 }
  0x7a   : > { %2042 = vmatpush.xpose.msk.msra.mxu3 %vm169_vm1, %v2855_v33  ;;  %1992 = vmatpush.xpose.msk.msra.mxu0 %vm169_vm1, %v346_v34  ;;  %v2886_v34 = vld [vmem:[#allocation2 + $0x16a] sm:$0xff] }
  0x7b   : > { %2009 = vmatpush.xpose.msk.msra.mxu1 %vm169_vm1, %v2860_v36 }
  0x7c   : > { %2025 = vmatpush.xpose.msk.msra.mxu2 %vm169_vm1, %v314_v31  ;;  %v2875_v31 = vld [vmem:[#allocation2 + $0x188] sm:$0xff] }
  0x7d   : > { %3515 = vst [vmem:[#allocation32_spill] sm:$0xff] %v2875_v31 }
  0x7e   : > { %2046 = vmatpush.xpose.msk.msrb.mxu0 %vm169_vm1, %v2862_v38  ;;  %2043 = vmatpush.xpose.msk.msra.mxu3 %vm169_vm1, %v2869_v27 }
  0x7f   : > { %2063 = vmatpush.xpose.msk.msrb.mxu1 %vm169_vm1, %v2866_v20 }
  0x80   : > { %2026 = vmatpush.xpose.msk.msra.mxu2 %vm169_vm1, %v313_v40  ;;  %v2892_v40 = vld [vmem:[#allocation2 + $0x180] sm:$0xff] }
  0x81   : > { %3516 = vst [vmem:[#allocation33_spill] sm:$0xff] %v2892_v40 }
  0x82   : > { %2098 = vmatpush.xpose.msk.msrb.mxu3 %vm169_vm1, %v2875_v31  ;;  %2047 = vmatpush.xpose.msk.msrb.mxu0 %vm169_vm1, %v2880_v18  ;;  %v2908_v31 = vld [vmem:[#allocation2 + $0x92] sm:$0xff] }
  0x83   : > { %2064 = vmatpush.xpose.msk.msrb.mxu1 %vm169_vm1, %v2886_v34 }
  0x84   : > { %2081 = vmatpush.xpose.msk.msrb.mxu2 %vm169_vm1, %v2855_v33  ;;  %v2912_v33 = vld [vmem:[#allocation2 + $0x152] sm:$0xff] }
  0x86   : > { %2099 = vmatpush.xpose.msk.msrb.mxu3 %vm169_vm1, %v2892_v40  ;;  %2048 = vmatpush.xpose.msk.msrb.mxu0 %vm169_vm1, %v2896_v6  ;;  %v2920_v40 = vld [vmem:[#allocation2 + $0x82] sm:$0xff] }
  0x87   : > { %2065 = vmatpush.xpose.msk.msrb.mxu1 %vm169_vm1, %v2900_v4 }
  0x88   : > { %2082 = vmatpush.xpose.msk.msrb.mxu2 %vm169_vm1, %v2869_v27  ;;  %v2924_v27 = vld [vmem:[#allocation2 + $0x142] sm:$0xff] }
  0x8a   : > { %2100 = vmatpush.xpose.msk.msrb.mxu3 %vm169_vm1, %v2530_v13  ;;  %2049 = vmatpush.xpose.msk.msrb.mxu0 %vm169_vm1, %v2908_v31  ;;  %v2936_v13 = vld [vmem:[#allocation2 + $0x13a] sm:$0xff] }
  0x8b   : > { %2066 = vmatpush.xpose.msk.msrb.mxu1 %vm169_vm1, %v2912_v33 }
  0x8c   : > { %2083 = vmatpush.xpose.msk.msrb.mxu2 %vm169_vm1, %v2522_v11  ;;  %v2932_v11 = vld [vmem:[#allocation2 + $0x7a] sm:$0xff] }
  0x8e   : > { %2101 = vmatpush.xpose.msk.msrb.mxu3 %vm169_vm1, %v2568_v16  ;;  %2050 = vmatpush.xpose.msk.msrb.mxu0 %vm169_vm1, %v2920_v40  ;;  %v2948_v16 = vld [vmem:[#allocation2 + $0x12a] sm:$0xff] }
  0x8f   : > { %2067 = vmatpush.xpose.msk.msrb.mxu1 %vm169_vm1, %v2924_v27 }
  0x90   : > { %2084 = vmatpush.xpose.msk.msrb.mxu2 %vm169_vm1, %v2538_v15  ;;  %v2944_v15 = vld [vmem:[#allocation2 + $0x6a] sm:$0xff] }
  0x92   : > { %2102 = vmatpush.xpose.msk.msrb.mxu3 %vm169_vm1, %v2637_v52  ;;  %2051 = vmatpush.xpose.msk.msrb.mxu0 %vm169_vm1, %v2932_v11  ;;  %v1976_v52 = vld [vmem:[%s3453_s1 + $0x8] sm:$0xff] }
  0x93   : > { %2068 = vmatpush.xpose.msk.msrb.mxu1 %vm169_vm1, %v2936_v13  ;;  %1993 = vmatmul.msk.f32.vlgmr.msra.gmra.mxu0 %vm169_vm1, %v1976_v52 }
  0x94   : > { %2085 = vmatpush.xpose.msk.msrb.mxu2 %vm169_vm1, %v2629_v48  ;;  %v345_v48 = vld [vmem:[%s3453_s1] sm:$0xff]  ;;  %2010 = vmatmul.msk.f32.vlgmr.msra.gmra.mxu1 %vm169_vm1, %v1976_v52  ;;  %v2982_v52 = vld [vmem:[#allocation2 + $0x112] sm:$0xff] }
  0x95   : > { %2044 = vmatmul.msk.f32.vlgmr.msra.gmra.mxu3 %vm169_vm1, %v345_v48  ;;  %2027 = vmatmul.msk.f32.vlgmr.msra.gmra.mxu2 %vm169_vm1, %v345_v48  ;;  %v2990_v48 = vld [vmem:[#allocation2 + $0x4a] sm:$0xff] }
  0x96   : > { %2103 = vmatpush.xpose.msk.msrb.mxu3 %vm169_vm1, %v2651_v59  ;;  %2052 = vmatpush.xpose.msk.msrb.mxu0 %vm169_vm1, %v2944_v15  ;;  %v2968_v59 = vld [vmem:[#allocation2 + $0x122] sm:$0xff] }
  0x97   : > { %2069 = vmatpush.xpose.msk.msrb.mxu1 %vm169_vm1, %v2948_v16 }
  0x98   : > { %2086 = vmatpush.xpose.msk.msrb.mxu2 %vm169_vm1, %v2645_v56  ;;  %v2963_v56 = vld [vmem:[#allocation2 + $0x62] sm:$0xff] }
  0x9a   : > { %2104 = vmatpush.xpose.msk.msrb.mxu3 %vm169_vm1, %v2675_v8  ;;  %2053 = vmatpush.xpose.msk.msrb.mxu0 %vm169_vm1, %v2963_v56  ;;  %v2994_v8 = vld [vmem:[#allocation2 + $0x10a] sm:$0xff] }
  0x9b   : > { %2070 = vmatpush.xpose.msk.msrb.mxu1 %vm169_vm1, %v2968_v59 }
  0x9c   : > { %2087 = vmatpush.xpose.msk.msrb.mxu2 %vm169_vm1, %v2669_v5 }
  0x9e   : > { %2105 = vmatpush.xpose.msk.msrb.mxu3 %vm169_vm1, %v2696_v25  ;;  %2054 = vmatpush.xpose.msk.msrb.mxu0 %vm169_vm1, %v2978_v63  ;;  %v3002_v25 = vld [vmem:[#allocation2 + $0x3a] sm:$0xff] }
  0x9f   : > { %2071 = vmatpush.xpose.msk.msrb.mxu1 %vm169_vm1, %v2982_v52 }
  0xa0   : > { %2088 = vmatpush.xpose.msk.msrb.mxu2 %vm169_vm1, %v2691_v23  ;;  %v3006_v23 = vld [vmem:[#allocation2 + $0xfa] sm:$0xff] }
  0xa2   : > { %2106 = vmatpush.xpose.msk.msrb.mxu3 %vm169_vm1, %v2719_v32  ;;  %2055 = vmatpush.xpose.msk.msrb.mxu0 %vm169_vm1, %v2990_v48  ;;  %v3014_v32 = vld [vmem:[#allocation2 + $0x32] sm:$0xff] }
  0xa3   : > { %2072 = vmatpush.xpose.msk.msrb.mxu1 %vm169_vm1, %v2994_v8 }
  0xa4   : > { %2089 = vmatpush.xpose.msk.msrb.mxu2 %vm169_vm1, %v2713_v30  ;;  %v3018_v30 = vld [vmem:[#allocation2 + $0xf2] sm:$0xff] }
  0xa6   : > { %2107 = vmatpush.xpose.msk.msrb.mxu3 %vm169_vm1, %v2744_v41  ;;  %2056 = vmatpush.xpose.msk.msrb.mxu0 %vm169_vm1, %v3002_v25  ;;  %v3026_v41 = vld [vmem:[#allocation2 + $0x22] sm:$0xff] }
  0xa7   : > { %2073 = vmatpush.xpose.msk.msrb.mxu1 %vm169_vm1, %v3006_v23 }
  0xa8   : > { %2090 = vmatpush.xpose.msk.msrb.mxu2 %vm169_vm1, %v2738_v39  ;;  %v3030_v39 = vld [vmem:[#allocation2 + $0xe2] sm:$0xff] }
  0xaa   : > { %2108 = vmatpush.xpose.msk.msrb.mxu3 %vm169_vm1, %v2764_v46  ;;  %2057 = vmatpush.xpose.msk.msrb.mxu0 %vm169_vm1, %v3014_v32  ;;  %v3038_v46 = vld [vmem:[#allocation2 + $0x1a] sm:$0xff] }
  0xab   : > { %2074 = vmatpush.xpose.msk.msrb.mxu1 %vm169_vm1, %v3018_v30 }
  0xac   : > { %2091 = vmatpush.xpose.msk.msrb.mxu2 %vm169_vm1, %v2759_v0  ;;  %v3042_v0 = vld [vmem:[#allocation2 + $0xda] sm:$0xff] }
  0xae   : > { %2109 = vmatpush.xpose.msk.msrb.mxu3 %vm169_vm1, %v2780_v54  ;;  %2058 = vmatpush.xpose.msk.msrb.mxu0 %vm169_vm1, %v3026_v41  ;;  %v659_v54 = vld [vmem:[#allocation2 + $0xa] sm:$0xff] }
  0xaf   : > { %2075 = vmatpush.xpose.msk.msrb.mxu1 %vm169_vm1, %v3030_v39 }
  0xb0   : > { %2092 = vmatpush.xpose.msk.msrb.mxu2 %vm169_vm1, %v2776_v51  ;;  %v3052_v51 = vld [vmem:[#allocation2 + $0xca] sm:$0xff] }
  0xb2   : > { %2110 = vmatpush.xpose.msk.msrb.mxu3 %vm169_vm1, %v2796_v60  ;;  %2059 = vmatpush.xpose.msk.msrb.mxu0 %vm169_vm1, %v3038_v46  ;;  %v658_v60 = vld [vmem:[#allocation2 + $0x2] sm:$0xff] }
  0xb3   : > { %2076 = vmatpush.xpose.msk.msrb.mxu1 %vm169_vm1, %v3042_v0 }
  0xb4   : > { %2093 = vmatpush.xpose.msk.msrb.mxu2 %vm169_vm1, %v2792_v58  ;;  %v3061_v58 = vld [vmem:[#allocation2 + $0xc2] sm:$0xff] }
  0xb6   : > { %2111 = vmatpush.xpose.msk.msrb.mxu3 %vm169_vm1, %v2812_v3  ;;  %2060 = vmatpush.xpose.msk.msrb.mxu0 %vm169_vm1, %v659_v54  ;;  %v3072_v54 = vld [vmem:[#allocation2 + $0x18a] sm:$0xff]  ;;  %v3091_v3 = vld [vmem:[#allocation2 + $0x181] sm:$0xff] }
  0xb7   : > { %2077 = vmatpush.xpose.msk.msrb.mxu1 %vm169_vm1, %v3052_v51 }
  0xb8   : > { %2094 = vmatpush.xpose.msk.msrb.mxu2 %vm169_vm1, %v2808_v1  ;;  %v3065_v1 = vld [vmem:[#allocation2 + $0x189] sm:$0xff] }
  0xba   : > { %2112 = vmatpush.xpose.msk.msrb.mxu3 %vm169_vm1, %v2828_v17  ;;  %2061 = vmatpush.xpose.msk.msrb.mxu0 %vm169_vm1, %v658_v60  ;;  %v2080_v60 = vld [vmem:[%s3453_s1 + $0x18] sm:$0xff] }
  0xbb   : > { %2078 = vmatpush.xpose.msk.msrb.mxu1 %vm169_vm1, %v3061_v58 }
  0xbc   : > { %2095 = vmatpush.xpose.msk.msrb.mxu2 %vm169_vm1, %v2824_v7  ;;  %v2045_v7 = vld [vmem:[%s3453_s1 + $0x10] sm:$0xff] }
  0xbd   : > { %2062 = vmatmul.msk.f32.vlgmr.msrb.gmra.mxu0 %vm169_vm1, %v2045_v7 }
  0xbe   : > { %2116 = vmatpush.xpose.msk.msra.mxu0 %vm169_vm1, %v2850_v29  ;;  %2113 = vmatpush.xpose.msk.msrb.mxu3 %vm169_vm1, %v2844_v24 }
  0xbf   : > { %2133 = vmatpush.xpose.msk.msra.mxu1 %vm169_vm1, %v3065_v1 }
  0xc0   : > { %2096 = vmatpush.xpose.msk.msrb.mxu2 %vm169_vm1, %v2840_v22  ;;  %2079 = vmatmul.msk.f32.vlgmr.msrb.gmra.mxu1 %vm169_vm1, %v2045_v7  ;;  %v3095_v22 = vld [vmem:[#allocation2 + $0x182] sm:$0xff]  ;;  %v1564_v7 = vld [vmem:[#allocation2 + $0x199] sm:$0xff] }
  0xc1   : > { %2114 = vmatmul.msk.f32.vlgmr.msrb.gmra.mxu3 %vm169_vm1, %v2080_v60 }
  0xc2   : > { %2168 = vmatpush.xpose.msk.msra.mxu3 %vm169_vm1, %v3072_v54  ;;  %2117 = vmatpush.xpose.msk.msra.mxu0 %vm169_vm1, %v2860_v36 }
  0xc3   : > { %2097 = vmatmul.msk.f32.vlgmr.msrb.gmra.mxu2 %vm169_vm1, %v2080_v60  ;;  %2134 = vmatpush.xpose.msk.msra.mxu1 %vm169_vm1, %v3091_v3  ;;  %v3523_v60 = vld [vmem:[#allocation32_spill] sm:$0xff] }
  0xc4   : > { %2151 = vmatpush.xpose.msk.msra.mxu2 %vm169_vm1, %v3052_v51 }
  0xc6   : > { %2169 = vmatpush.xpose.msk.msra.mxu3 %vm169_vm1, %v3095_v22  ;;  %2118 = vmatpush.xpose.msk.msra.mxu0 %vm169_vm1, %v2510_v9  ;;  %v3517_v9 = vld [vmem:[#allocation23_spill] sm:$0xff] }
  0xc7   : > { %2135 = vmatpush.xpose.msk.msra.mxu1 %vm169_vm1, %v2516_v10  ;;  %v3518_v10 = vld [vmem:[#allocation26_spill] sm:$0xff] }
  0xc8   : > { %2152 = vmatpush.xpose.msk.msra.mxu2 %vm169_vm1, %v3061_v58 }
  0xca   : > { %2170 = vmatpush.xpose.msk.msra.mxu3 %vm169_vm1, %v2866_v20  ;;  %2119 = vmatpush.xpose.msk.msra.mxu0 %vm169_vm1, %v2524_v12  ;;  %v3519_v12 = vld [vmem:[#allocation27_spill] sm:$0xff] }
  0xcb   : > { %2136 = vmatpush.xpose.msk.msra.mxu1 %vm169_vm1, %v2532_v14  ;;  %v3520_v14 = vld [vmem:[#allocation28_spill] sm:$0xff] }
  0xcc   : > { %2153 = vmatpush.xpose.msk.msra.mxu2 %vm169_vm1, %v2862_v38 }
  0xce   : > { %2171 = vmatpush.xpose.msk.msra.mxu3 %vm169_vm1, %v2886_v34  ;;  %2120 = vmatpush.xpose.msk.msra.mxu0 %vm169_vm1, %v2617_v42  ;;  %v1390_v42 = vld [vmem:[#allocation2 + $0x1a0] sm:$0xff] }
  0xcf   : > { %2137 = vmatpush.xpose.msk.msra.mxu1 %vm169_vm1, %v2623_v45  ;;  %v3521_v45 = vld [vmem:[#allocation29_spill] sm:$0xff] }
  0xd0   : > { %2154 = vmatpush.xpose.msk.msra.mxu2 %vm169_vm1, %v2880_v18 }
  0xd2   : > { %2172 = vmatpush.xpose.msk.msra.mxu3 %vm169_vm1, %v2900_v4  ;;  %2121 = vmatpush.xpose.msk.msra.mxu0 %vm169_vm1, %v2631_v49  ;;  %v1565_v49 = vld [vmem:[#allocation2 + $0x1a1] sm:$0xff] }
  0xd3   : > { %2138 = vmatpush.xpose.msk.msra.mxu1 %vm169_vm1, %v2639_v53  ;;  %v2115_v53 = vld [vmem:[%s3453_s1 + $0x20] sm:$0xff] }
  0xd4   : > { %2155 = vmatpush.xpose.msk.msra.mxu2 %vm169_vm1, %v2896_v6 }
  0xd6   : > { %2173 = vmatpush.xpose.msk.msra.mxu3 %vm169_vm1, %v2912_v33  ;;  %2122 = vmatpush.xpose.msk.msra.mxu0 %vm169_vm1, %v2657_v62 }
  0xd7   : > { %2139 = vmatpush.xpose.msk.msra.mxu1 %vm169_vm1, %v2663_v2 }
  0xd8   : > { %2156 = vmatpush.xpose.msk.msra.mxu2 %vm169_vm1, %v2908_v31 }
  0xda   : > { %2174 = vmatpush.xpose.msk.msra.mxu3 %vm169_vm1, %v2924_v27  ;;  %2123 = vmatpush.xpose.msk.msra.mxu0 %vm169_vm1, %v2681_v19 }
  0xdb   : > { %2140 = vmatpush.xpose.msk.msra.mxu1 %vm169_vm1, %v2686_v21 }
  0xdc   : > { %2157 = vmatpush.xpose.msk.msra.mxu2 %vm169_vm1, %v2920_v40 }
  0xde   : > { %2175 = vmatpush.xpose.msk.msra.mxu3 %vm169_vm1, %v2936_v13  ;;  %2124 = vmatpush.xpose.msk.msra.mxu0 %vm169_vm1, %v2701_v26 }
  0xdf   : > { %2141 = vmatpush.xpose.msk.msra.mxu1 %vm169_vm1, %v2707_v28 }
  0xe0   : > { %2158 = vmatpush.xpose.msk.msra.mxu2 %vm169_vm1, %v2932_v11 }
  0xe2   : > { %2176 = vmatpush.xpose.msk.msra.mxu3 %vm169_vm1, %v2948_v16  ;;  %2125 = vmatpush.xpose.msk.msra.mxu0 %vm169_vm1, %v2726_v35 }
  0xe3   : > { %2142 = vmatpush.xpose.msk.msra.mxu1 %vm169_vm1, %v2732_v37 }
  0xe4   : > { %2159 = vmatpush.xpose.msk.msra.mxu2 %vm169_vm1, %v2944_v15 }
  0xe6   : > { %2177 = vmatpush.xpose.msk.msra.mxu3 %vm169_vm1, %v2968_v59  ;;  %2126 = vmatpush.xpose.msk.msra.mxu0 %vm169_vm1, %v2749_v43 }
  0xe7   : > { %2143 = vmatpush.xpose.msk.msra.mxu1 %vm169_vm1, %v2754_v44 }
  0xe8   : > { %2160 = vmatpush.xpose.msk.msra.mxu2 %vm169_vm1, %v2963_v56 }
  0xea   : > { %2178 = vmatpush.xpose.msk.msra.mxu3 %vm169_vm1, %v2982_v52  ;;  %2127 = vmatpush.xpose.msk.msra.mxu0 %vm169_vm1, %v2768_v47 }
  0xeb   : > { %2144 = vmatpush.xpose.msk.msra.mxu1 %vm169_vm1, %v2772_v50 }
  0xec   : > { %2161 = vmatpush.xpose.msk.msra.mxu2 %vm169_vm1, %v2978_v63 }
  0xee   : > { %2179 = vmatpush.xpose.msk.msra.mxu3 %vm169_vm1, %v2994_v8  ;;  %2128 = vmatpush.xpose.msk.msra.mxu0 %vm169_vm1, %v2784_v55 }
  0xef   : > { %2145 = vmatpush.xpose.msk.msra.mxu1 %vm169_vm1, %v2788_v57 }
  0xf0   : > { %2162 = vmatpush.xpose.msk.msra.mxu2 %vm169_vm1, %v2990_v48 }
  0xf2   : > { %2180 = vmatpush.xpose.msk.msra.mxu3 %vm169_vm1, %v3006_v23  ;;  %2129 = vmatpush.xpose.msk.msra.mxu0 %vm169_vm1, %v2800_v61 }
  0xf3   : > { %2146 = vmatpush.xpose.msk.msra.mxu1 %vm169_vm1, %v3517_v9 }
  0xf4   : > { %2163 = vmatpush.xpose.msk.msra.mxu2 %vm169_vm1, %v3002_v25 }
  0xf6   : > { %2181 = vmatpush.xpose.msk.msra.mxu3 %vm169_vm1, %v3018_v30  ;;  %2130 = vmatpush.xpose.msk.msra.mxu0 %vm169_vm1, %v3518_v10  ;;  %v3525_v10 = vld [vmem:[#allocation33_spill] sm:$0xff] }
  0xf7   : > { %2147 = vmatpush.xpose.msk.msra.mxu1 %vm169_vm1, %v3519_v12 }
  0xf8   : > { %2164 = vmatpush.xpose.msk.msra.mxu2 %vm169_vm1, %v3014_v32 }
  0xfa   : > { %2182 = vmatpush.xpose.msk.msra.mxu3 %vm169_vm1, %v3030_v39  ;;  %2131 = vmatpush.xpose.msk.msra.mxu0 %vm169_vm1, %v3520_v14  ;;  %v1386_v14 = vld [vmem:[#allocation2 + $0x170] sm:$0xff] }
  0xfb   : > { %2148 = vmatpush.xpose.msk.msra.mxu1 %vm169_vm1, %v3521_v45 }
  0xfc   : > { %2165 = vmatpush.xpose.msk.msra.mxu2 %vm169_vm1, %v3026_v41  ;;  %v2150_v41 = vld [vmem:[%s3453_s1 + $0x28] sm:$0xff] }
  0xfd   : > { %2132 = vmatmul.msk.f32.vlgmr.msra.gmra.mxu0 %vm169_vm1, %v2115_v53 }
  0xfe   : > { %2183 = vmatpush.xpose.msk.msra.mxu3 %vm169_vm1, %v3042_v0  ;;  %2186 = vmatpush.xpose.msk.msrb.mxu0 %vm169_vm1, %v2828_v17  ;;  %v3522_v17 = vld [vmem:[#allocation30_spill] sm:$0xff] }
  0xff   : > { %2203 = vmatpush.xpose.msk.msrb.mxu1 %vm169_vm1, %v1390_v42  ;;  %v1545_v42 = vld [vmem:[#allocation2 + $0xb1] sm:$0xff] }
 0x100   : > { %2166 = vmatpush.xpose.msk.msra.mxu2 %vm169_vm1, %v3038_v46  ;;  %v1389_v46 = vld [vmem:[#allocation2 + $0x198] sm:$0xff]  ;;  %2149 = vmatmul.msk.f32.vlgmr.msra.gmra.mxu1 %vm169_vm1, %v2115_v53  ;;  %v1560_v53 = vld [vmem:[#allocation2 + $0x169] sm:$0xff] }
 0x101   : > { %2184 = vmatmul.msk.f32.vlgmr.msra.gmra.mxu3 %vm169_vm1, %v2150_v41 }
 0x102   : > { %2238 = vmatpush.xpose.msk.msrb.mxu3 %vm169_vm1, %v1565_v49  ;;  %2187 = vmatpush.xpose.msk.msrb.mxu0 %vm169_vm1, %v2844_v24  ;;  %v3524_v24 = vld [vmem:[#allocation31_spill] sm:$0xff]  ;;  %v1544_v49 = vld [vmem:[#allocation2 + $0xa9] sm:$0xff] }
 0x103   : > { %2167 = vmatmul.msk.f32.vlgmr.msra.gmra.mxu2 %vm169_vm1, %v2150_v41  ;;  %2204 = vmatpush.xpose.msk.msrb.mxu1 %vm169_vm1, %v1389_v46  ;;  %v3526_v41 = vld [vmem:[#allocation6_spill] sm:$0xff]  ;;  %v3527_v46 = vld [vmem:[#allocation7_spill] sm:$0xff] }
 0x104   : > { %2221 = vmatpush.xpose.msk.msrb.mxu2 %vm169_vm1, %v3519_v12  ;;  %v1370_v12 = vld [vmem:[#allocation2 + $0xb0] sm:$0xff] }
 0x106   : > { %2239 = vmatpush.xpose.msk.msrb.mxu3 %vm169_vm1, %v1564_v7  ;;  %2188 = vmatpush.xpose.msk.msrb.mxu0 %vm169_vm1, %v3522_v17  ;;  %v1542_v7 = vld [vmem:[#allocation2 + $0x91] sm:$0xff] }
 0x107   : > { %2205 = vmatpush.xpose.msk.msrb.mxu1 %vm169_vm1, %v3523_v60  ;;  %v1558_v17 = vld [vmem:[#allocation2 + $0x151] sm:$0xff]  ;;  %v3528_v60 = vld [vmem:[#allocation8_spill] sm:$0xff] }
 0x108   : > { %2222 = vmatpush.xpose.msk.msrb.mxu2 %vm169_vm1, %v3521_v45  ;;  %v1561_v45 = vld [vmem:[#allocation2 + $0x171] sm:$0xff] }
 0x10a   : > { %2240 = vmatpush.xpose.msk.msrb.mxu3 %vm169_vm1, %v3065_v1  ;;  %2189 = vmatpush.xpose.msk.msrb.mxu0 %vm169_vm1, %v3524_v24  ;;  %v1369_v1 = vld [vmem:[#allocation2 + $0xa8] sm:$0xff] }
 0x10b   : > { %2206 = vmatpush.xpose.msk.msrb.mxu1 %vm169_vm1, %v3525_v10  ;;  %v3529_v24 = vld [vmem:[#allocation9_spill] sm:$0xff]  ;;  %v3530_v10 = vld [vmem:[#allocation10_spill] sm:$0xff] }
 0x10c   : > { %2223 = vmatpush.xpose.msk.msrb.mxu2 %vm169_vm1, %v2850_v29  ;;  %v1385_v29 = vld [vmem:[#allocation2 + $0x168] sm:$0xff] }
 0x10e   : > { %2241 = vmatpush.xpose.msk.msrb.mxu3 %vm169_vm1, %v3091_v3  ;;  %2190 = vmatpush.xpose.msk.msrb.mxu0 %vm169_vm1, %v1370_v12  ;;  %v1543_v3 = vld [vmem:[#allocation2 + $0x99] sm:$0xff] }
 0x10f   : > { %2207 = vmatpush.xpose.msk.msrb.mxu1 %vm169_vm1, %v1386_v14  ;;  %v3531_v12 = vld [vmem:[#allocation11_spill] sm:$0xff]  ;;  %v3532_v14 = vld [vmem:[#allocation12_spill] sm:$0xff] }
 0x110   : > { %2224 = vmatpush.xpose.msk.msrb.mxu2 %vm169_vm1, %v2860_v36  ;;  %v1559_v36 = vld [vmem:[#allocation2 + $0x159] sm:$0xff] }
 0x112   : > { %2242 = vmatpush.xpose.msk.msrb.mxu3 %vm169_vm1, %v1561_v45  ;;  %2191 = vmatpush.xpose.msk.msrb.mxu0 %vm169_vm1, %v1369_v1 }
 0x113   : > { %2208 = vmatpush.xpose.msk.msrb.mxu1 %vm169_vm1, %v1385_v29 }
 0x114   : > { %2225 = vmatpush.xpose.msk.msrb.mxu2 %vm169_vm1, %v1545_v42  ;;  %v3534_v42 = vld [vmem:[#allocation14_spill] sm:$0xff] }
 0x116   : > { %2243 = vmatpush.xpose.msk.msrb.mxu3 %vm169_vm1, %v1560_v53  ;;  %2192 = vmatpush.xpose.msk.msrb.mxu0 %vm169_vm1, %v3526_v41 }
 0x117   : > { %2209 = vmatpush.xpose.msk.msrb.mxu1 %vm169_vm1, %v3527_v46 }
 0x118   : > { %2226 = vmatpush.xpose.msk.msrb.mxu2 %vm169_vm1, %v1544_v49 }
 0x11a   : > { %2244 = vmatpush.xpose.msk.msrb.mxu3 %vm169_vm1, %v1559_v36  ;;  %2193 = vmatpush.xpose.msk.msrb.mxu0 %vm169_vm1, %v3528_v60 }
 0x11b   : > { %2210 = vmatpush.xpose.msk.msrb.mxu1 %vm169_vm1, %v3529_v24 }
 0x11c   : > { %2227 = vmatpush.xpose.msk.msrb.mxu2 %vm169_vm1, %v1543_v3 }
 0x11e   : > { %2245 = vmatpush.xpose.msk.msrb.mxu3 %vm169_vm1, %v1558_v17  ;;  %2194 = vmatpush.xpose.msk.msrb.mxu0 %vm169_vm1, %v2669_v5  ;;  %v3533_v5 = vld [vmem:[#allocation13_spill] sm:$0xff] }
 0x11f   : > { %2211 = vmatpush.xpose.msk.msrb.mxu1 %vm169_vm1, %v3530_v10 }
 0x120   : > { %2228 = vmatpush.xpose.msk.msrb.mxu2 %vm169_vm1, %v1542_v7 }
 0x122   : > { %2246 = vmatpush.xpose.msk.msrb.mxu3 %vm169_vm1, %v2663_v2  ;;  %2195 = vmatpush.xpose.msk.msrb.mxu0 %vm169_vm1, %v3531_v12  ;;  %v3536_v2 = vld [vmem:[#allocation16_spill] sm:$0xff] }
 0x123   : > { %2212 = vmatpush.xpose.msk.msrb.mxu1 %vm169_vm1, %v3532_v14 }
 0x124   : > { %2229 = vmatpush.xpose.msk.msrb.mxu2 %vm169_vm1, %v2657_v62  ;;  %v3535_v62 = vld [vmem:[#allocation15_spill] sm:$0xff] }
 0x126   : > { %2247 = vmatpush.xpose.msk.msrb.mxu3 %vm169_vm1, %v2686_v21  ;;  %2196 = vmatpush.xpose.msk.msrb.mxu0 %vm169_vm1, %v3533_v5  ;;  %v3538_v21 = vld [vmem:[#allocation18_spill] sm:$0xff] }
 0x127   : > { %2213 = vmatpush.xpose.msk.msrb.mxu1 %vm169_vm1, %v3534_v42 }
 0x128   : > { %2230 = vmatpush.xpose.msk.msrb.mxu2 %vm169_vm1, %v2681_v19  ;;  %v3537_v19 = vld [vmem:[#allocation17_spill] sm:$0xff] }
 0x12a   : > { %2248 = vmatpush.xpose.msk.msrb.mxu3 %vm169_vm1, %v2707_v28  ;;  %2197 = vmatpush.xpose.msk.msrb.mxu0 %vm169_vm1, %v3535_v62  ;;  %v3540_v28 = vld [vmem:[#allocation20_spill] sm:$0xff] }
 0x12b   : > { %2214 = vmatpush.xpose.msk.msrb.mxu1 %vm169_vm1, %v3536_v2 }
 0x12c   : > { %2231 = vmatpush.xpose.msk.msrb.mxu2 %vm169_vm1, %v2701_v26  ;;  %v3539_v26 = vld [vmem:[#allocation19_spill] sm:$0xff] }
 0x12e   : > { %2249 = vmatpush.xpose.msk.msrb.mxu3 %vm169_vm1, %v2732_v37  ;;  %2198 = vmatpush.xpose.msk.msrb.mxu0 %vm169_vm1, %v3537_v19  ;;  %v3542_v37 = vld [vmem:[#allocation22_spill] sm:$0xff] }
 0x12f   : > { %2215 = vmatpush.xpose.msk.msrb.mxu1 %vm169_vm1, %v3538_v21 }
 0x130   : > { %2232 = vmatpush.xpose.msk.msrb.mxu2 %vm169_vm1, %v2726_v35  ;;  %v3541_v35 = vld [vmem:[#allocation21_spill] sm:$0xff] }
 0x132   : > { %2250 = vmatpush.xpose.msk.msrb.mxu3 %vm169_vm1, %v2754_v44  ;;  %2199 = vmatpush.xpose.msk.msrb.mxu0 %vm169_vm1, %v3539_v26  ;;  %v1740_v44 = vld [vmem:[#allocation2 + $0x1a2] sm:$0xff] }
 0x133   : > { %2216 = vmatpush.xpose.msk.msrb.mxu1 %vm169_vm1, %v3540_v28 }
 0x134   : > { %2233 = vmatpush.xpose.msk.msrb.mxu2 %vm169_vm1, %v2749_v43  ;;  %v3543_v43 = vld [vmem:[#allocation24_spill] sm:$0xff] }
 0x136   : > { %2251 = vmatpush.xpose.msk.msrb.mxu3 %vm169_vm1, %v2772_v50  ;;  %2200 = vmatpush.xpose.msk.msrb.mxu0 %vm169_vm1, %v3541_v35  ;;  %v3544_v50 = vld [vmem:[#allocation25_spill] sm:$0xff] }
 0x137   : > { %2217 = vmatpush.xpose.msk.msrb.mxu1 %vm169_vm1, %v3542_v37 }
 0x138   : > { %2234 = vmatpush.xpose.msk.msrb.mxu2 %vm169_vm1, %v2768_v47  ;;  %v2185_v47 = vld [vmem:[%s3453_s1 + $0x30] sm:$0xff] }
 0x13a   : > { %2252 = vmatpush.xpose.msk.msrb.mxu3 %vm169_vm1, %v2788_v57  ;;  %2201 = vmatpush.xpose.msk.msrb.mxu0 %vm169_vm1, %v3543_v43  ;;  %v1739_v57 = vld [vmem:[#allocation2 + $0x19a] sm:$0xff] }
 0x13b   : > { %2218 = vmatpush.xpose.msk.msrb.mxu1 %vm169_vm1, %v3544_v50 }
 0x13c   : > { %2235 = vmatpush.xpose.msk.msrb.mxu2 %vm169_vm1, %v2784_v55  ;;  %v2220_v55 = vld [vmem:[%s3453_s1 + $0x38] sm:$0xff] }
 0x13d   : > { %2202 = vmatmul.msk.f32.vlgmr.msrb.gmra.mxu0 %vm169_vm1, %v2185_v47 }
 0x13e   : > { %2253 = vmatpush.xpose.msk.msrb.mxu3 %vm169_vm1, %v3517_v9  ;;  %2256 = vmatpush.xpose.msk.msra.mxu0 %vm169_vm1, %v3030_v39  ;;  %v312_v39 = vld [vmem:[%s3454_s2] sm:$0xff] }
 0x13f   : > { %2273 = vmatpush.xpose.msk.msra.mxu1 %vm169_vm1, %v1740_v44 }
 0x140   : > { %2236 = vmatpush.xpose.msk.msrb.mxu2 %vm169_vm1, %v2800_v61  ;;  %2219 = vmatmul.msk.f32.vlgmr.msrb.gmra.mxu1 %vm169_vm1, %v2185_v47 }
 0x141   : > { %2254 = vmatmul.msk.f32.vlgmr.msrb.gmra.mxu3 %vm169_vm1, %v2220_v55 }
 0x142   : > { %2257 = vmatpush.xpose.msk.msra.mxu0 %vm169_vm1, %v3042_v0  ;;  %v2404_v0 = vmov 0  }
 0x143   : > { %2237 = vmatmul.msk.f32.vlgmr.msrb.gmra.mxu2 %vm169_vm1, %v2220_v55  ;;  %2274 = vmatpush.xpose.msk.msra.mxu1 %vm169_vm1, %v1739_v57 }
 0x144   : > { %2338 = vset.pattern.permute.xlu0 %v2404_v0 }
 0x145   : > { %1886 = vperm.xlu0 %2338, %v312_v39  }
 0x146   : > { %2258 = vmatpush.xpose.msk.msra.mxu0 %vm169_vm1, %v3052_v51  ;;  %v655_v51 = vpop.f32.mrf.mxu3 }
 0x147   : > { %2275 = vmatpush.xpose.msk.msra.mxu1 %vm169_vm1, %v3072_v54 }
 0x14a   : > { %2259 = vmatpush.xpose.msk.msra.mxu0 %vm169_vm1, %v3061_v58 }
 0x14b   : > { %2276 = vmatpush.xpose.msk.msra.mxu1 %vm169_vm1, %v3095_v22 }
 0x14e   : > { %2260 = vmatpush.xpose.msk.msra.mxu0 %vm169_vm1, %v2862_v38 }
 0x14f   : > { %2277 = vmatpush.xpose.msk.msra.mxu1 %vm169_vm1, %v2866_v20 }
 0x152   : > { %2261 = vmatpush.xpose.msk.msra.mxu0 %vm169_vm1, %v2880_v18 }
 0x153   : > { %2278 = vmatpush.xpose.msk.msra.mxu1 %vm169_vm1, %v2886_v34 }
 0x156   : > { %2262 = vmatpush.xpose.msk.msra.mxu0 %vm169_vm1, %v2896_v6 }
 0x157   : > { %2279 = vmatpush.xpose.msk.msra.mxu1 %vm169_vm1, %v2900_v4 }
 0x15a   : > { %2263 = vmatpush.xpose.msk.msra.mxu0 %vm169_vm1, %v2908_v31 }
 0x15b   : > { %2280 = vmatpush.xpose.msk.msra.mxu1 %vm169_vm1, %v2912_v33 }
 0x15e   : > { %2264 = vmatpush.xpose.msk.msra.mxu0 %vm169_vm1, %v2920_v40 }
 0x15f   : > { %2281 = vmatpush.xpose.msk.msra.mxu1 %vm169_vm1, %v2924_v27 }
 0x162   : > { %2265 = vmatpush.xpose.msk.msra.mxu0 %vm169_vm1, %v2932_v11 }
 0x163   : > { %2282 = vmatpush.xpose.msk.msra.mxu1 %vm169_vm1, %v2936_v13 }
 0x166   : > { %2266 = vmatpush.xpose.msk.msra.mxu0 %vm169_vm1, %v2944_v15 }
 0x167   : > { %2283 = vmatpush.xpose.msk.msra.mxu1 %vm169_vm1, %v2948_v16 }
 0x16a   : > { %2267 = vmatpush.xpose.msk.msra.mxu0 %vm169_vm1, %v2963_v56  ;;  %v2255_v56 = vld [vmem:[%s3453_s1 + $0x40] sm:$0xff] }
 0x16b   : > { %2284 = vmatpush.xpose.msk.msra.mxu1 %vm169_vm1, %v2968_v59  ;;  %v496_v59 = vpop.f32.mrf.mxu0 }
 0x16e   : > { %2268 = vmatpush.xpose.msk.msra.mxu0 %vm169_vm1, %v2978_v63 }
 0x16f   : > { %2285 = vmatpush.xpose.msk.msra.mxu1 %vm169_vm1, %v2982_v52 }
 0x172   : > { %2269 = vmatpush.xpose.msk.msra.mxu0 %vm169_vm1, %v2990_v48 }
 0x173   : > { %2286 = vmatpush.xpose.msk.msra.mxu1 %vm169_vm1, %v2994_v8  ;;  %v516_v8 = vpop.f32.mrf.mxu1 }
 0x174   : > { %v656_v18 = vadd.f32 %v655_v51, %v516_v8 }
 0x176   : > { %2270 = vmatpush.xpose.msk.msra.mxu0 %vm169_vm1, %v3002_v25  ;;  %v635_v25 = vpop.f32.mrf.mxu2 }
 0x177   : > { %2287 = vmatpush.xpose.msk.msra.mxu1 %vm169_vm1, %v3006_v23  ;;  %v808_v23 = vpop.f32.mrf.mxu0  ;;  %v636_v4 = vadd.f32 %v635_v25, %v496_v59 }
 0x17a   : > { %2271 = vmatpush.xpose.msk.msra.mxu0 %vm169_vm1, %v3014_v32  ;;  %v1003_v32 = vpop.f32.mrf.mxu3 }
 0x17b   : > { %2288 = vmatpush.xpose.msk.msra.mxu1 %vm169_vm1, %v3018_v30  ;;  %v828_v58 = vpop.f32.mrf.mxu1  ;;  %v831_v30 = vadd.f32 %v808_v23, %v636_v4 }
 0x17c   : > { %v832_v38 = vadd.f32 %v828_v58, %v656_v18 }
 0x17d   : > { %2272 = vmatmul.msk.f32.vlgmr.msra.gmra.mxu0 %vm169_vm1, %v2255_v56 }
 0x17e   : > { %2289 = vmatmul.msk.f32.vlgmr.msra.gmra.mxu1 %vm169_vm1, %v2255_v56  ;;  %v983_v61 = vpop.f32.mrf.mxu2  ;;  %v1007_v31 = vadd.f32 %v1003_v32, %v832_v38 }
 0x17f   : > { %v1158_v63 = vpop.f32.mrf.mxu0  ;;  %v1006_v27 = vadd.f32 %v983_v61, %v831_v30 }
 0x181   : > { %v1181_v40 = vadd.f32 %v1158_v63, %v1006_v27 }
 0x183   : > { %v1178_v6 = vpop.f32.mrf.mxu1 }
 0x184   : > { %v1353_v33 = vpop.f32.mrf.mxu3  ;;  %v1182_v13 = vadd.f32 %v1178_v6, %v1007_v31 }
 0x186   : > { %v1333_v20 = vpop.f32.mrf.mxu2  ;;  %v1357_v16 = vadd.f32 %v1353_v33, %v1182_v13 }
 0x187   : > { %v1356_v15 = vadd.f32 %v1333_v20, %v1181_v40 }
 0x1b7   : > { %v1887_v29 = vpop.permute.xlu0 %1886 }
 0x1ba   : > { %v1509_v34 = vpop.f32.mrf.mxu0 }
 0x1bb   : > { %v1532_v48 = vadd.f32 %v1509_v34, %v1356_v15 }
 0x1bd   : > { %v1529_v11 = vpop.f32.mrf.mxu1 }
 0x1be   : > { %v1533_v22 = vadd.f32 %v1529_v11, %v1357_v16 }
 0x1c4   : > { %v1704_v54 = vpop.f32.mrf.mxu3 }
 0x1c5   : > { %v1708_v45 = vadd.f32 %v1704_v54, %v1533_v22 }
 0x1c6   : > { %v1684_v52 = vpop.f32.mrf.mxu2 }
 0x1c7   : > { %v1707_v9 = vadd.f32 %v1684_v52, %v1532_v48 }
 0x1fa   : > { %v1859_v1 = vpop.f32.mrf.mxu0 }
 0x1fb   : > { %v1882_v49 = vadd.f32 %v1859_v1, %v1707_v9  ;;  %v1879_v53 = vpop.f32.mrf.mxu1 }
 0x1fc   : > { %v1883_v3 = vadd.f32 %v1879_v53, %v1708_v45 }
 0x1fd   : > { %v1889_v36 = vadd.f32 %v1887_v29, %v1882_v49 }
 0x1fe   : > { %v1890_v41 = vadd.f32 %v1887_v29, %v1883_v3 }
 0x1ff   : > { %1891 = vst [vmem:[%s163_s10] sm:$0xff] %v1889_v36 }
 0x200   : > { %1892 = vst [vmem:[%s163_s10 + $0x8] sm:$0xff] %v1890_v41 }
 0x201   : > { %2366 = shalt.err (!%p2363_p3)
}
 0x202   : > { %2297 = dma.vmem_to_hbm [thread:$0]  (%p2463_p5), %s1908_s11, 256, %s1910_s17, %s1894_s16  }
 0x203 PF: > { %p2303_p4 = scmp.ge.s32.totalorder %s2401_s15, 2  ;;  %s1921_s29 = sand.u32 1, %s2389_s12  }
 0x204   : > { %s1922_s30 = scalar_lea.sflag [#allocation4], %s1921_s29 }
 0x205   : > { %p2300_p7 = pnand %p2303_p4, %p2467_p6 }
 0x207   : > { %p2301_p8 = pneg %p2300_p7 }
 0x209   : > { %2384 = dma.done.wait (%p2301_p8), %s1922_s30, 256  }
 0x20a   : > { %2386 = vsyncadd (%p2301_p8), %s1922_s30, 4294967040  ;;  %p13_p9 = scmp.ge.s32.totalorder %s2450_s18, 4   ;;  %s3545_s12 = smov %s2393_s13 }
 0x20b   : > { %s3546_s13 = smov %s2397_s14  ;;  %s3547_s14 = smov %s2461_s21 }
 0x20c   : > { %s3548_s15 = smov %s2450_s18  ;;  %15 = sbr.rel (!%p13_p9) target bundleno = 3 (0x3), region = 78 }
 0x211   :  { %1928 = vsyncpa [#allocation4], 1 }
 0x212   :  { %1930 = vsyncpa [#allocation4 + $0x1], 1 }

</bundles_post_ra>
